<compile_context>
chip_gen: v7x
topology: tpu7x:2x2x1
jax: 0.10.0
libtpu: 0.0.40
codegen_flags: <defaults>
</compile_context>

<pallas_src>
from functools import partial

import jax
import jax.numpy as jnp
import numpy as np
from jax import lax
from jax.experimental import pallas as pl
from jax.experimental.pallas import tpu as pltpu


def _cdist_contrastive_kernel(
    x_row_ref, x_col_ref, x_par_ref,          # (tm,D), (tk,D), (tm,D)
    nrm_row_ref, nrm_col_ref, nrm_par_ref,    # (tm,1), (1,tk), (tm,1)
    logdenom_ref, pos_ref,                    # outputs: (tm,1), (tm,1)
    acc_ref,                                  # scratch:  (tm,1) f32
    *, tau, normalize, tm, tk, precision):
    i = pl.program_id(0)          # row-block index   (parallel)
    k = pl.program_id(1)          # column-block index (reduction, last)
    inv_tau = 1.0 / tau

    @pl.when(k == 0)
    def _init():
        acc_ref[...] = jnp.zeros_like(acc_ref)

    x_row = x_row_ref[...].astype(jnp.float32)    # (tm, D)
    x_col = x_col_ref[...].astype(jnp.float32)    # (tk, D)
    nrm_row = nrm_row_ref[...]                    # (tm, 1)
    nrm_col = nrm_col_ref[...]                    # (1, tk)

    # Pairwise squared distances of this tile via the Gram matrix (MXU).
    # HIGHEST precision keeps the cancellation-sensitive d2 accurate; pass
    # precision=DEFAULT from the wrapper when the downstream tolerance allows.
    gram = lax.dot_general(
        x_row, x_col, (((1,), (1,)), ((), ())),
        preferred_element_type=jnp.float32, precision=precision)     # (tm, tk)
    d2 = nrm_row * nrm_row + nrm_col * nrm_col - 2.0 * gram
    dist = jnp.sqrt(jnp.maximum(d2, 0.0))

    if normalize:
        norm_diff = jnp.abs(nrm_row - nrm_col)
        arg = dist * inv_tau / jnp.maximum(norm_diff, 1e-16)
    else:
        arg = dist * inv_tau
    e = jnp.exp(arg)                                                 # (tm, tk)

    # Exclude the self-similarity term exactly (== original's row_sum - exp(0)).
    rows = i * tm + lax.broadcasted_iota(jnp.int32, (tm, tk), 0)
    cols = k * tk + lax.broadcasted_iota(jnp.int32, (tm, tk), 1)
    e = jnp.where(rows == cols, 0.0, e)

    acc_ref[...] += jnp.sum(e, axis=-1, keepdims=True)               # online row sum

    @pl.when(k == 0)
    def _positive():
        # Positive pair of global row a is row (a + N) mod 2N of x (partner tile).
        x_par = x_par_ref[...].astype(jnp.float32)
        diff = x_row - x_par
        pos_d = jnp.sqrt(jnp.sum(diff * diff, axis=-1, keepdims=True))
        if normalize:
            nd = jnp.abs(nrm_row - nrm_par_ref[...])   # no clamp: matches original module
            pos_ref[...] = pos_d * inv_tau / nd
        else:
            pos_ref[...] = pos_d * inv_tau

    @pl.when(k == pl.num_programs(1) - 1)
    def _finalize():
        logdenom_ref[...] = jnp.log(acc_ref[...])


def _pick_tile(n, candidates):
    for c in candidates:
        if c <= n and n % c == 0:
            return c
    return n


def cdist_contrastive_loss(xi, xj, *, tau, normalize=True, tm=None, tk=None,
                           precision=jax.lax.Precision.HIGHEST):
    """Pallas TPU implementation of CdistContrastiveLoss.forward."""
    assert xi.shape == xj.shape and xi.ndim == 2
    n, d = xi.shape
    n2 = 2 * n
    # TODO(synk): pad N to a multiple of 8 for arbitrary batch sizes.
    assert n % 8 == 0, "batch size N must be a multiple of 8"

    # Tile choices (re-derived per shape; defaults sized for 256-wide MXU and
    # modest VMEM; override tm/tk explicitly if desired):
    #   tm | N               -> partner (positive-pair) tile is a whole row block
    #   tk | 2N, tk % 128==0 -> lane-compliant column tiles (or tk == 2N)
    if tm is None:
        tm = _pick_tile(n, (256, 128, 64, 32, 16, 8))
    if tk is None:
        tk = next((c for c in (512, 384, 256, 128) if n2 % c == 0), n2)
    assert n % tm == 0 and n2 % tk == 0 and (tk % 128 == 0 or tk == n2)

    nrb = n2 // tm          # row blocks
    ncb = n2 // tk          # column (reduction) blocks
    nhalf = n // tm         # block offset of the positive-pair partner

    # Wrapper-side prep (cheap XLA ops): concat + precomputed norms in both layouts.
    x = jnp.concatenate([xi, xj], axis=0).astype(jnp.float32)        # (2N, D)
    nrm = jnp.sqrt(jnp.sum(x * x, axis=-1, keepdims=True))           # (2N, 1)
    nrm_t = jnp.transpose(nrm)                                       # (1, 2N)

    kernel = partial(_cdist_contrastive_kernel, tau=float(tau),
                     normalize=normalize, tm=tm, tk=tk, precision=precision)

    grid_spec = pltpu.PrefetchScalarGridSpec(
        num_scalar_prefetch=0,
        grid=(nrb, ncb),
        in_specs=[
            pl.BlockSpec((tm, d), lambda i, k: (i, 0)),                   # x row tile
            pl.BlockSpec((tk, d), lambda i, k: (k, 0)),                   # x column tile
            pl.BlockSpec((tm, d), lambda i, k: ((i + nhalf) % nrb, 0)),   # partner rows
            pl.BlockSpec((tm, 1), lambda i, k: (i, 0)),                   # ‖x‖ (rows)
            pl.BlockSpec((1, tk), lambda i, k: (0, k)),                   # ‖x‖ (cols)
            pl.BlockSpec((tm, 1), lambda i, k: ((i + nhalf) % nrb, 0)),   # ‖x‖ (partner)
        ],
        out_specs=[
            pl.BlockSpec((tm, 1), lambda i, k: (i, 0)),   # log(denominator) per row
            pl.BlockSpec((tm, 1), lambda i, k: (i, 0)),   # positive log-term per row
        ],
        scratch_shapes=[pltpu.VMEM((tm, 1), jnp.float32)],
    )

    logdenom, pos = pl.pallas_call(
        kernel,
        out_shape=(jax.ShapeDtypeStruct((n2, 1), jnp.float32),
                   jax.ShapeDtypeStruct((n2, 1), jnp.float32)),
        grid_spec=grid_spec,
        compiler_params=pltpu.CompilerParams(
            dimension_semantics=("parallel", "arbitrary")),
    )(x, x, x, nrm, nrm_t, nrm)

    # loss = mean(-log(sim_match / denom)) = mean(log denom) - mean(pos)
    return jnp.mean(logdenom) - jnp.mean(pos)


def _reference_loss(xi, xj, *, tau, normalize=True):
    """Pure-JAX reference mirroring the (intended) PyTorch semantics."""
    x = jnp.concatenate([xi, xj], axis=0)
    diff = x[:, None, :] - x[None, :, :]
    d_full = jnp.sqrt(jnp.maximum(jnp.sum(diff * diff, axis=-1), 0.0))
    if normalize:
        nrm = jnp.linalg.norm(x, axis=1)
        nd = jnp.abs(nrm[:, None] - nrm[None, :])
        d_full = d_full / jnp.maximum(nd, 1e-16)
    sim_mat = jnp.exp(d_full / tau)
    pos_d = jnp.sqrt(jnp.sum((xi - xj) ** 2, axis=-1))
    if normalize:
        pos_d = pos_d / jnp.abs(jnp.linalg.norm(xi, axis=1) - jnp.linalg.norm(xj, axis=1))
    sim_match = jnp.exp(pos_d / tau)
    sim_match = jnp.concatenate([sim_match, sim_match], axis=0)
    denom = jnp.sum(sim_mat, axis=-1) - 1.0
    return jnp.mean(-jnp.log(sim_match / denom))


if __name__ == "__main__":
    N, D = 128, 32
    TAU = 0.5

    key = jax.random.PRNGKey(0)
    k1, k2 = jax.random.split(key)

    # Inputs whose exp(dist / |Δnorm| / tau) arguments stay bounded in float32 for
    # BOTH kernel and reference: every row ≈ scale * (common unit direction) plus a
    # small random perturbation, so rows with similar norms are also close in space.
    u = jax.random.normal(k1, (D,), dtype=jnp.float32)
    u = u / jnp.linalg.norm(u)
    w = jax.random.normal(k2, (2 * N, D), dtype=jnp.float32)
    w = w / jnp.linalg.norm(w, axis=1, keepdims=True)
    scales = 1.0 + 0.05 * jnp.arange(2 * N, dtype=jnp.float32)
    xfull = scales[:, None] * u[None, :] + 0.02 * w
    zi, zj = xfull[:N], xfull[N:]

    # tm/tk = 128 here so the small demo exercises both the parallel row axis
    # (2 row blocks) and the online column reduction (2 column blocks).
    loss = cdist_contrastive_loss(zi, zj, tau=TAU, normalize=True, tm=128, tk=128)
    loss = jax.block_until_ready(loss)

    ref = jax.block_until_ready(_reference_loss(zi, zj, tau=TAU, normalize=True))

    assert np.isfinite(np.asarray(loss)), loss
    assert np.allclose(np.asarray(loss), np.asarray(ref), rtol=2e-3, atol=1e-4), (loss, ref)

    print("KERNEL_OK")
</pallas_src>

<mosaic_0001>
module attributes {stable_mosaic.version = 11 : i64} {
  func.func @_cdist_contrastive_kernel(%arg0: i32, %arg1: i32, %arg2: memref<128x32xf32, #tpu.memory_space<vmem>>, %arg3: memref<128x32xf32, #tpu.memory_space<vmem>>, %arg4: memref<128x32xf32, #tpu.memory_space<vmem>>, %arg5: memref<128x1xf32, #tpu.memory_space<vmem>>, %arg6: memref<1x128xf32, #tpu.memory_space<vmem>>, %arg7: memref<128x1xf32, #tpu.memory_space<vmem>>, %arg8: memref<128x1xf32, #tpu.memory_space<vmem>>, %arg9: memref<128x1xf32, #tpu.memory_space<vmem>>, %arg10: memref<128x1xf32, #tpu.memory_space<vmem>>) attributes {dimension_semantics = [#tpu.dimension_semantics<parallel>, #tpu.dimension_semantics<arbitrary>], iteration_bounds = array<i64: 2, 2>, scalar_prefetch = 0 : i64, scratch_operands = 1 : i64, tpu.core_type = #tpu.core_type<tc>, window_params = [{transform_indices = @transform_0, window_bounds = array<i64: 128, 32>}, {transform_indices = @transform_1, window_bounds = array<i64: 128, 32>}, {transform_indices = @transform_2, window_bounds = array<i64: 128, 32>}, {transform_indices = @transform_3, window_bounds = array<i64: 128, 1>}, {transform_indices = @transform_4, window_bounds = array<i64: 1, 128>}, {transform_indices = @transform_5, window_bounds = array<i64: 128, 1>}, {transform_indices = @transform_6, window_bounds = array<i64: 128, 1>}, {transform_indices = @transform_7, window_bounds = array<i64: 128, 1>}]} {
    %c0_i32 = arith.constant 0 : i32
    %0 = arith.cmpi eq, %arg1, %c0_i32 : i32
    %1 = arith.extui %0 : i1 to i32
    %c0_i32_0 = arith.constant 0 : i32
    %2 = arith.cmpi ne, %1, %c0_i32_0 : i32
    scf.if %2 {
      %cst_22 = arith.constant 0.000000e+00 : f32
      %51 = vector.broadcast %cst_22 : f32 to vector<128x1xf32>
      %c0_23 = arith.constant 0 : index
      %c0_24 = arith.constant 0 : index
      %52 = vector.load %arg10[%c0_23, %c0_24] : memref<128x1xf32, #tpu.memory_space<vmem>>, vector<128x1xf32>
      tpu.vector_store %arg10[%c0_23, %c0_24], %51 {strides = array<i32>} : memref<128x1xf32, #tpu.memory_space<vmem>>, vector<128x1xf32>,
    } else {
    }
    %c0 = arith.constant 0 : index
    %c0_1 = arith.constant 0 : index
    %3 = vector.load %arg2[%c0, %c0_1] : memref<128x32xf32, #tpu.memory_space<vmem>>, vector<128x32xf32>
    %c0_2 = arith.constant 0 : index
    %c0_3 = arith.constant 0 : index
    %4 = vector.load %arg3[%c0_2, %c0_3] : memref<128x32xf32, #tpu.memory_space<vmem>>, vector<128x32xf32>
    %c0_4 = arith.constant 0 : index
    %c0_5 = arith.constant 0 : index
    %5 = vector.load %arg5[%c0_4, %c0_5] : memref<128x1xf32, #tpu.memory_space<vmem>>, vector<128x1xf32>
    %c0_6 = arith.constant 0 : index
    %c0_7 = arith.constant 0 : index
    %6 = vector.load %arg6[%c0_6, %c0_7] : memref<1x128xf32, #tpu.memory_space<vmem>>, vector<1x128xf32>
    %cst = arith.constant dense<0.000000e+00> : vector<128x128xf32>
    %7 = tpu.matmul %3, %4, %cst {dimension_numbers = #tpu.dot_dimension_numbers<[1], [1], [0], [0], [0, 0, 1, 0], [], []>, precision = #tpu.contract_precision<fp32>} : vector<128x32xf32>, vector<128x32xf32>, vector<128x128xf32> -> vector<128x128xf32>
    %8 = arith.mulf %5, %5 : vector<128x1xf32>
    %9 = arith.mulf %6, %6 : vector<1x128xf32>
    %10 = vector.broadcast %8 : vector<128x1xf32> to vector<128x128xf32>
    %11 = vector.broadcast %9 : vector<1x128xf32> to vector<128x128xf32>
    %12 = arith.addf %10, %11 : vector<128x128xf32>
    %cst_8 = arith.constant 2.000000e+00 : f32
    %13 = vector.broadcast %cst_8 : f32 to vector<128x128xf32>
    %14 = arith.mulf %13, %7 : vector<128x128xf32>
    %15 = arith.subf %12, %14 : vector<128x128xf32>
    %cst_9 = arith.constant 0.000000e+00 : f32
    %16 = vector.broadcast %cst_9 : f32 to vector<128x128xf32>
    %17 = arith.maximumf %15, %16 : vector<128x128xf32>
    %18 = math.sqrt %17 : vector<128x128xf32>
    %19 = vector.broadcast %5 : vector<128x1xf32> to vector<128x128xf32>
    %20 = vector.broadcast %6 : vector<1x128xf32> to vector<128x128xf32>
    %21 = arith.subf %19, %20 : vector<128x128xf32>
    %22 = math.absf %21 : vector<128x128xf32>
    %cst_10 = arith.constant 2.000000e+00 : f32
    %23 = vector.broadcast %cst_10 : f32 to vector<128x128xf32>
    %24 = arith.mulf %18, %23 : vector<128x128xf32>
    %cst_11 = arith.constant 1.000000e-16 : f32
    %25 = vector.broadcast %cst_11 : f32 to vector<128x128xf32>
    %26 = arith.maximumf %22, %25 : vector<128x128xf32>
    %27 = arith.divf %24, %26 : vector<128x128xf32>
    %28 = math.exp %27 : vector<128x128xf32>
    %c128_i32 = arith.constant 128 : i32
    %29 = arith.muli %arg0, %c128_i32 : i32
    %30 = tpu.iota {dimensions = array<i32: 0>} : vector<128x128xi32>
    %31 = vector.broadcast %29 : i32 to vector<128x128xi32>
    %32 = arith.addi %31, %30 : vector<128x128xi32>
    %c128_i32_12 = arith.constant 128 : i32
    %33 = arith.muli %arg1, %c128_i32_12 : i32
    %34 = tpu.iota {dimensions = array<i32: 1>} : vector<128x128xi32>
    %35 = vector.broadcast %33 : i32 to vector<128x128xi32>
    %36 = arith.addi %35, %34 : vector<128x128xi32>
    %37 = arith.cmpi eq, %32, %36 : vector<128x128xi32>
    %cst_13 = arith.constant 0.000000e+00 : f32
    %38 = vector.broadcast %cst_13 : f32 to vector<128x128xf32>
    %39 = arith.select %37, %38, %28 : vector<128x128xi1>, vector<128x128xf32>
    %c0_14 = arith.constant 0 : index
    %c0_15 = arith.constant 0 : index
    %40 = vector.load %arg10[%c0_14, %c0_15] : memref<128x1xf32, #tpu.memory_space<vmem>>, vector<128x1xf32>
    %cst_16 = arith.constant dense<0.000000e+00> : vector<128xf32>
    %41 = vector.multi_reduction <add>, %39, %cst_16 [1] : vector<128x128xf32> to vector<128xf32>
    %42 = vector.shape_cast %41 : vector<128xf32> to vector<128x1xf32>
    %43 = arith.addf %40, %42 : vector<128x1xf32>
    %c0_17 = arith.constant 0 : index
    %c0_18 = arith.constant 0 : index
    %44 = vector.load %arg10[%c0_17, %c0_18] : memref<128x1xf32, #tpu.memory_space<vmem>>, vector<128x1xf32>
    tpu.vector_store %arg10[%c0_17, %c0_18], %43 {strides = array<i32>} : memref<128x1xf32, #tpu.memory_space<vmem>>, vector<128x1xf32>,
    %c0_i32_19 = arith.constant 0 : i32
    %45 = arith.cmpi eq, %arg1, %c0_i32_19 : i32
    %46 = arith.extui %45 : i1 to i32
    %c0_i32_20 = arith.constant 0 : i32
    %47 = arith.cmpi ne, %46, %c0_i32_20 : i32
    scf.if %47 {
      %c0_22 = arith.constant 0 : index
      %c0_23 = arith.constant 0 : index
      %51 = vector.load %arg4[%c0_22, %c0_23] : memref<128x32xf32, #tpu.memory_space<vmem>>, vector<128x32xf32>
      %52 = arith.subf %3, %51 : vector<128x32xf32>
      %53 = arith.mulf %52, %52 : vector<128x32xf32>
      %cst_24 = arith.constant dense<0.000000e+00> : vector<128xf32>
      %54 = vector.multi_reduction <add>, %53, %cst_24 [1] : vector<128x32xf32> to vector<128xf32>
      %55 = vector.shape_cast %54 : vector<128xf32> to vector<128x1xf32>
      %56 = math.sqrt %55 : vector<128x1xf32>
      %c0_25 = arith.constant 0 : index
      %c0_26 = arith.constant 0 : index
      %57 = vector.load %arg7[%c0_25, %c0_26] : memref<128x1xf32, #tpu.memory_space<vmem>>, vector<128x1xf32>
      %58 = arith.subf %5, %57 : vector<128x1xf32>
      %59 = math.absf %58 : vector<128x1xf32>
      %cst_27 = arith.constant 2.000000e+00 : f32
      %60 = vector.broadcast %cst_27 : f32 to vector<128x1xf32>
      %61 = arith.mulf %56, %60 : vector<128x1xf32>
      %62 = arith.divf %61, %59 : vector<128x1xf32>
      %c0_28 = arith.constant 0 : index
      %c0_29 = arith.constant 0 : index
      %63 = vector.load %arg9[%c0_28, %c0_29] : memref<128x1xf32, #tpu.memory_space<vmem>>, vector<128x1xf32>
      tpu.vector_store %arg9[%c0_28, %c0_29], %62 {strides = array<i32>} : memref<128x1xf32, #tpu.memory_space<vmem>>, vector<128x1xf32>,
    } else {
    }
    %c1_i32 = arith.constant 1 : i32
    %48 = arith.cmpi eq, %arg1, %c1_i32 : i32
    %49 = arith.extui %48 : i1 to i32
    %c0_i32_21 = arith.constant 0 : i32
    %50 = arith.cmpi ne, %49, %c0_i32_21 : i32
    scf.if %50 {
      %c0_22 = arith.constant 0 : index
      %c0_23 = arith.constant 0 : index
      %51 = vector.load %arg10[%c0_22, %c0_23] : memref<128x1xf32, #tpu.memory_space<vmem>>, vector<128x1xf32>
      %52 = math.log %51 : vector<128x1xf32>
      %c0_24 = arith.constant 0 : index
      %c0_25 = arith.constant 0 : index
      %53 = vector.load %arg8[%c0_24, %c0_25] : memref<128x1xf32, #tpu.memory_space<vmem>>, vector<128x1xf32>
      tpu.vector_store %arg8[%c0_24, %c0_25], %52 {strides = array<i32>} : memref<128x1xf32, #tpu.memory_space<vmem>>, vector<128x1xf32>,
    } else {
    }
    return
  }
  func.func @transform_0(%arg0: i32, %arg1: i32) -> (i32, i32) {
    %c0_i32 = arith.constant 0 : i32
    %c0_i32_0 = arith.constant 0 : i32
    return %arg0, %c0_i32 : i32, i32
  }
  func.func @transform_1(%arg0: i32, %arg1: i32) -> (i32, i32) {
    %c0_i32 = arith.constant 0 : i32
    %c0_i32_0 = arith.constant 0 : i32
    return %arg1, %c0_i32 : i32, i32
  }
  func.func @transform_2(%arg0: i32, %arg1: i32) -> (i32, i32) {
    %c1_i32 = arith.constant 1 : i32
    %0 = arith.addi %arg0, %c1_i32 : i32
    %c2_i32 = arith.constant 2 : i32
    %c0_i32 = arith.constant 0 : i32
    %1 = arith.cmpi eq, %c2_i32, %c0_i32 : i32
    %c1_i32_0 = arith.constant 1 : i32
    %2 = arith.select %1, %c1_i32_0, %c2_i32 : i32
    %3 = arith.remsi %0, %2 : i32
    %c0_i32_1 = arith.constant 0 : i32
    %4 = arith.cmpi ne, %3, %c0_i32_1 : i32
    %c0_i32_2 = arith.constant 0 : i32
    %5 = arith.cmpi slt, %3, %c0_i32_2 : i32
    %c0_i32_3 = arith.constant 0 : i32
    %6 = arith.cmpi slt, %2, %c0_i32_3 : i32
    %7 = arith.xori %5, %6 : i1
    %8 = arith.andi %7, %4 : i1
    %9 = arith.addi %3, %2 : i32
    %10 = arith.select %8, %9, %3 : i32
    %c0_i32_4 = arith.constant 0 : i32
    %c0_i32_5 = arith.constant 0 : i32
    return %10, %c0_i32_4 : i32, i32
  }
  func.func @transform_3(%arg0: i32, %arg1: i32) -> (i32, i32) {
    %c0_i32 = arith.constant 0 : i32
    %c0_i32_0 = arith.constant 0 : i32
    return %arg0, %c0_i32 : i32, i32
  }
  func.func @transform_4(%arg0: i32, %arg1: i32) -> (i32, i32) {
    %c0_i32 = arith.constant 0 : i32
    %c0_i32_0 = arith.constant 0 : i32
    return %c0_i32, %arg1 : i32, i32
  }
  func.func @transform_5(%arg0: i32, %arg1: i32) -> (i32, i32) {
    %c1_i32 = arith.constant 1 : i32
    %0 = arith.addi %arg0, %c1_i32 : i32
    %c2_i32 = arith.constant 2 : i32
    %c0_i32 = arith.constant 0 : i32
    %1 = arith.cmpi eq, %c2_i32, %c0_i32 : i32
    %c1_i32_0 = arith.constant 1 : i32
    %2 = arith.select %1, %c1_i32_0, %c2_i32 : i32
    %3 = arith.remsi %0, %2 : i32
    %c0_i32_1 = arith.constant 0 : i32
    %4 = arith.cmpi ne, %3, %c0_i32_1 : i32
    %c0_i32_2 = arith.constant 0 : i32
    %5 = arith.cmpi slt, %3, %c0_i32_2 : i32
    %c0_i32_3 = arith.constant 0 : i32
    %6 = arith.cmpi slt, %2, %c0_i32_3 : i32
    %7 = arith.xori %5, %6 : i1
    %8 = arith.andi %7, %4 : i1
    %9 = arith.addi %3, %2 : i32
    %10 = arith.select %8, %9, %3 : i32
    %c0_i32_4 = arith.constant 0 : i32
    %c0_i32_5 = arith.constant 0 : i32
    return %10, %c0_i32_4 : i32, i32
  }
  func.func @transform_6(%arg0: i32, %arg1: i32) -> (i32, i32) {
    %c0_i32 = arith.constant 0 : i32
    %c0_i32_0 = arith.constant 0 : i32
    return %arg0, %c0_i32 : i32, i32
  }
  func.func @transform_7(%arg0: i32, %arg1: i32) -> (i32, i32) {
    %c0_i32 = arith.constant 0 : i32
    %c0_i32_0 = arith.constant 0 : i32
    return %arg0, %c0_i32 : i32, i32
  }
}

</mosaic_0001>

<bundles_post_ra>
// kernel: tpu_custom_call.1
= control target key start
LH: loop header
LB: loop body
LE: loop exit
PB: predicated region body
PF: predicated region fallthrough
CT: control target
= control target key end

     0   :  { %s4403_s24 = smov 0   ;;  %s4405_s25 = smov 0   ;;  %s6056_s0 = inlined_call_operand.vmem [shape: f32[256,32], index: 0, kind: input, shape index: {}]   ;;  %s6057_s1 = inlined_call_operand.vmem [shape: f32[256,32], index: 1, kind: input, shape index: {}]   ;;  %s6058_s2 = inlined_call_operand.vmem [shape: f32[256,32], index: 2, kind: input, shape index: {}]   ;;  %s6059_s3 = inlined_call_operand.vmem [shape: f32[256,1], index: 3, kind: input, shape index: {}]   ;;  %s6060_s4 = inlined_call_operand.vmem [shape: f32[1,256], index: 4, kind: input, shape index: {}]   ;;  %s6061_s5 = inlined_call_operand.vmem [shape: f32[256,1], index: 5, kind: input, shape index: {}]   ;;  %s6062_s6 = inlined_call_operand.vmem [shape: f32[256,1], index: 6, kind: output, shape index: {0}]   ;;  %s6063_s7 = inlined_call_operand.vmem [shape: f32[256,1], index: 7, kind: output, shape index: {1}]  }
   0x1   :  { %6135 = sst [smem:[#allocation62_spill]] %s6056_s0  ;;  %s4407_s26 = smov 0  }
   0x2   :  { %s4409_s27 = smov 0   ;;  %s4411_s28 = smov 0  }
   0x3 LB: > { %s27_s29 = sadd.s32 1, %s4351_s26  ;;  %s30_s30 = sadd.s32 1, %s4355_s27  ;;  %s4359_s28 = sphi %s4411_s28, %s18_s28   ;;  %s4355_s27 = sphi %s4409_s27, %s6284_s27   ;;  %s4351_s26 = sphi %s4407_s26, %s6283_s26   ;;  %s4347_s25 = sphi %s4405_s25, %s6282_s25   ;;  %s4343_s24 = sphi %s4403_s24, %s6281_s24  }
   0x4   : > { %p28_p0 = scmp.ge.s32.totalorder %s27_s29, 2  ;;  %p3257_p1 = scmp.ge.s32.totalorder %s4359_s28, 1 }
   0x5   : > { %p409_p2 = scmp.lt.s32.totalorder %s4359_s28, 5 }
   0x6   : > { %s6286_s29 = smov (%p28_p0, %s27_s29), 0  ;;  %s6288_s30 = smov (!%p28_p0, %s30_s30), %s4355_s27 }
   0x7   : > { %6136 = sst [smem:[#allocation3_spill]] %s6286_s29  ;;  %p410_p3 = pnand %p3257_p1, %p409_p2 }
   0x8   : > { %p32_p4 = scmp.ge.s32.totalorder %s6288_s30, 2 }
   0x9   : > { %413 = sbr.rel (%p410_p3) target bundleno = 885 (0x375), region = 44 }
   0xa   : > { %s6290_s30 = smov (%p32_p4, %s6288_s30), 0 }
   0xb   : > { %6137 = sst [smem:[#allocation4_spill]] %s6290_s30 }
  0x10   : > { %s3258_s8 = sshll.u32 %s4347_s25, 4  ;;  %s3260_s9 = sshll.u32 %s4343_s24, 4 }
  0x11   : > { %p496_p5 = scmp.lt.s32.totalorder %s3258_s8, 31  ;;  %p502_p6 = scmp.lt.s32.totalorder %s3260_s9, 31 }
  0x12   : > { %s507_s10 = sadd.s32 1, %s4347_s25  ;;  %p545_p7 = scmp.lt.s32.totalorder %s4343_s24, 1 }
  0x13   : > { %s6292_s8 = smov (!%p496_p5, %s3258_s8), 31  ;;  %s6294_s9 = smov (!%p502_p6, %s3260_s9), 31 }
  0x14   : > { %s3259_s11 = sshll.u32 %s6292_s8, 3  ;;  %p508_p8 = scmp.lt.s32.totalorder %s507_s10, 0 }
  0x15   : > { %s6138_s0 = sld [smem:[#allocation62_spill]]  ;;  %s3261_s15 = sshll.u32 %s6294_s9, 3 }
  0x16   : > { %s4449_s18 = scalar_lea.vmem %s6057_s1, %s3261_s15  ;;  %s509_s19 = ssub.s32 0, %s507_s10 }
  0x17   : > { %s3262_s20 = smin.u32 %s509_s19, %s507_s10  ;;  %s4454_s23 = scalar_lea.vmem %s6059_s3, %s3259_s11 }
  0x18   : > { %s511_s8 = sand.u32 1, %s3262_s20   ;;  %s4459_s12 = scalar_lea.vmem %s6062_s6, %s3259_s11 }
  0x19   : > { %s512_s13 = ssub.s32 0, %s511_s8  ;;  %s4464_s16 = scalar_lea.vmem %s6063_s7, %s3259_s11 }
  0x1a   : > { %s6296_s13 = smov (!%p508_p8, %s512_s13), %s511_s8  ;;  %p3278_p11 = scmp.ne.s32.totalorder %s4343_s24, 0 }
  0x1b   : > { %s4444_s14 = scalar_lea.vmem %s6138_s0, %s3259_s11  ;;  %p3264_p9 = scmp.lt.s32.totalorder %s6296_s13, 0  ;;  %vm596_vm0 = vcmask (!%p3278_p11), 7168   ;;  %v4361_v0 = vmov (!%p3278_p11), 0.0  }
  0x1c   : > { %s4469_s10 = scalar_select %p545_p7, %s4343_s24, 1 }
  0x1d   : > { %s518_s15 = sadd.s32 2, %s6296_s13  ;;  %597 = vst.msk [vmem:[#allocation2] sm:$0xff] (!%p3278_p11), %vm596_vm0, %v4361_v0  ;;  %598 = vst.msk [vmem:[#allocation2 + $0x8] sm:$0xff] (!%p3278_p11), %vm596_vm0, %v4361_v0 }
  0x1e   : > { %s547_s20 = scalar_lea.vmem %s6060_s4, %s4469_s10  ;;  %s6298_s15 = smov (!%p3264_p9, %s518_s15), %s6296_s13  ;;  %599 = vst.msk [vmem:[#allocation2 + $0x10] sm:$0xff] (!%p3278_p11), %vm596_vm0, %v4361_v0  ;;  %600 = vst.msk [vmem:[#allocation2 + $0x18] sm:$0xff] (!%p3278_p11), %vm596_vm0, %v4361_v0 }
  0x1f   : > { %s3265_s29 = sshll.u32 %s6298_s15, 4  ;;  %595 = sbr.rel (%p3278_p11) target bundleno = 38 (0x26), region = 48  ;;  %601 = vst.msk [vmem:[#allocation2 + $0x20] sm:$0xff] (!%p3278_p11), %vm596_vm0, %v4361_v0  ;;  %602 = vst.msk [vmem:[#allocation2 + $0x28] sm:$0xff] (!%p3278_p11), %vm596_vm0, %v4361_v0 }
  0x20   : > { %p521_p10 = scmp.lt.s32.totalorder %s3265_s29, 31  ;;  %603 = vst.msk [vmem:[#allocation2 + $0x30] sm:$0xff] (!%p3278_p11), %vm596_vm0, %v4361_v0  ;;  %604 = vst.msk [vmem:[#allocation2 + $0x38] sm:$0xff] (!%p3278_p11), %vm596_vm0, %v4361_v0 }
  0x21   : > { %605 = vst.msk [vmem:[#allocation2 + $0x40] sm:$0xff] (!%p3278_p11), %vm596_vm0, %v4361_v0  ;;  %606 = vst.msk [vmem:[#allocation2 + $0x48] sm:$0xff] (!%p3278_p11), %vm596_vm0, %v4361_v0 }
  0x22   : > { %s6300_s29 = smov (!%p521_p10, %s3265_s29), 31  ;;  %607 = vst.msk [vmem:[#allocation2 + $0x50] sm:$0xff] (!%p3278_p11), %vm596_vm0, %v4361_v0  ;;  %608 = vst.msk [vmem:[#allocation2 + $0x58] sm:$0xff] (!%p3278_p11), %vm596_vm0, %v4361_v0 }
  0x23   : > { %s3266_s30 = sshll.u32 %s6300_s29, 3  ;;  %609 = vst.msk [vmem:[#allocation2 + $0x60] sm:$0xff] (!%p3278_p11), %vm596_vm0, %v4361_v0  ;;  %610 = vst.msk [vmem:[#allocation2 + $0x68] sm:$0xff] (!%p3278_p11), %vm596_vm0, %v4361_v0 }
  0x24   : > { %s4478_s11 = scalar_lea.vmem %s6058_s2, %s3266_s30  ;;  %s4483_s9 = scalar_lea.vmem %s6061_s5, %s3266_s30  ;;  %611 = vst.msk [vmem:[#allocation2 + $0x70] sm:$0xff] (!%p3278_p11), %vm596_vm0, %v4361_v0  ;;  %612 = vst.msk [vmem:[#allocation2 + $0x78] sm:$0xff] (!%p3278_p11), %vm596_vm0, %v4361_v0 }
  0x26 PF: > { %v629_v1 = vld [vmem:[%s4449_s18] sm:$0xff]  ;;  %v630_v2 = vld [vmem:[%s4449_s18 + $0x8] sm:$0xff]  ;;  %vm662_vm1 = vcmask 261120   ;;  %v631_v3 = vld [vmem:[%s4449_s18 + $0x10] sm:$0xff]  ;;  %s3280_s13 = sshll.u32 %s4343_s24, 7 }
  0x27   : > { %v4508_v4 = vsel %vm662_vm1, %v629_v1, 0  ;;  %v4511_v5 = vsel %vm662_vm1, %v630_v2, 0  ;;  %v632_v6 = vld [vmem:[%s4449_s18 + $0x18] sm:$0xff]  ;;  %v4515_v7 = vsel %vm662_vm1, %v631_v3, 0  ;;  %v633_v12 = vld [vmem:[%s4449_s18 + $0x20] sm:$0xff]  ;;  %v634_v13 = vld [vmem:[%s4449_s18 + $0x28] sm:$0xff] }
  0x28   : > { %v760_v8 = vand.u32 4294901760, %v4508_v4  ;;  %v763_v9 = vand.u32 4294901760, %v4511_v5  ;;  %v4520_v10 = vsel %vm662_vm1, %v632_v6, 0  ;;  %v766_v11 = vand.u32 4294901760, %v4515_v7  ;;  %v4549_v19 = vld [vmem:[%s4444_s14] sm:$0xff]  ;;  %v635_v22 = vld [vmem:[%s4449_s18 + $0x30] sm:$0xff] }
  0x29   : > { %v769_v14 = vand.u32 4294901760, %v4520_v10  ;;  %v4539_v17 = vsel %vm662_vm1, %v633_v12, 0  ;;  %v4542_v18 = vsel %vm662_vm1, %v634_v13, 0  ;;  %6139 = vst [vmem:[#allocation5_spill] sm:$0xff] %v4549_v19  ;;  %v636_v23 = vld [vmem:[%s4449_s18 + $0x38] sm:$0xff]  ;;  %v664_v24 = vsel %vm662_vm1, %v4549_v19, 0 }
  0x2a   : > { %v4530_v15 = vpack.c.bf16 %v763_v9, %v760_v8  ;;  %v772_v20 = vand.u32 4294901760, %v4539_v17  ;;  %v775_v21 = vand.u32 4294901760, %v4542_v18  ;;  %v4559_v25 = vand.u32 4294901760, %v664_v24  ;;  %v637_v34 = vld [vmem:[%s4449_s18 + $0x40] sm:$0xff]  ;;  %v638_v35 = vld [vmem:[%s4449_s18 + $0x48] sm:$0xff]  ;;  %v639_v42 = vld [vmem:[%s4449_s18 + $0x50] sm:$0xff] }
  0x2b   : > { %v4536_v16 = vpack.c.bf16 %v769_v14, %v766_v11  ;;  %v4568_v27 = vsel %vm662_vm1, %v635_v22, 0  ;;  %v4571_v28 = vsel %vm662_vm1, %v636_v23, 0  ;;  %v4593_v38 = vsel %vm662_vm1, %v637_v34, 0  ;;  %v640_v43 = vld [vmem:[%s4449_s18 + $0x58] sm:$0xff]  ;;  %v641_v49 = vld [vmem:[%s4449_s18 + $0x60] sm:$0xff]  ;;  %v642_v50 = vld [vmem:[%s4449_s18 + $0x68] sm:$0xff] }
  0x2c   : > { %3814 = vmatprep.subr.bf16.mxu1 %v4530_v15  ;;  %3910 = vmatprep.subr.bf16.mxu0 %v4530_v15  ;;  %v4565_v26 = vpack.c.bf16 %v775_v21, %v772_v20  ;;  %v4574_v29 = vsub.f32 %v664_v24, %v4559_v25  ;;  %v778_v31 = vand.u32 4294901760, %v4568_v27  ;;  %v781_v32 = vand.u32 4294901760, %v4571_v28  ;;  %v643_v54 = vld [vmem:[%s4449_s18 + $0x70] sm:$0xff]  ;;  %v644_v55 = vld [vmem:[%s4449_s18 + $0x78] sm:$0xff]  ;;  %v4639_v62 = vld [vmem:[%s4444_s14 + $0x8] sm:$0xff] }
  0x2d   : > { %3816 = vmatpush3.bf16.xpose.msra.mxu1 %v4530_v15  ;;  %3912 = vmatpush3.bf16.xpose.msra.mxu0 %v4530_v15  ;;  %v4596_v39 = vsel %vm662_vm1, %v638_v35, 0  ;;  %v784_v40 = vand.u32 4294901760, %v4593_v38  ;;  %v742_v45 = vsel %vm662_vm1, %v639_v42, 0  ;;  %v745_v46 = vsel %vm662_vm1, %v640_v43, 0  ;;  %6144 = vst [vmem:[#allocation10_spill] sm:$0xff] %v4639_v62  ;;  %v4681_v22 = vld [vmem:[%s4444_s14 + $0x20] sm:$0xff] }
  0x2e   : > { %3818 = vmatprep.subr.bf16.mxu1 %v4536_v16  ;;  %3914 = vmatprep.subr.bf16.mxu0 %v4536_v16  ;;  %6140 = vst [vmem:[#allocation6_spill] sm:$0xff] %v4574_v29  ;;  %v842_v30 = vand.u32 4294901760, %v4574_v29  ;;  %v4590_v37 = vpack.c.bf16 %v781_v32, %v778_v31  ;;  %v787_v41 = vand.u32 4294901760, %v4596_v39  ;;  %v790_v47 = vand.u32 4294901760, %v742_v45  ;;  %6149 = vst [vmem:[#allocation15_spill] sm:$0xff] %v4681_v22  ;;  %v4839_v19 = vld [vmem:[%s4444_s14 + $0x58] sm:$0xff] }
  0x2f   : > { %v793_v48 = vand.u32 4294901760, %v745_v46  ;;  %v748_v52 = vsel %vm662_vm1, %v641_v49, 0  ;;  %v751_v53 = vsel %vm662_vm1, %v642_v50, 0  ;;  %v754_v58 = vsel %vm662_vm1, %v643_v54, 0  ;;  %v4759_v50 = vld [vmem:[%s4444_s14 + $0x30] sm:$0xff]  ;;  %6169 = vst [vmem:[#allocation33_spill] sm:$0xff] %v4839_v19 }
  0x30   : > { %v843_v33 = vsub.f32 %v4574_v29, %v842_v30  ;;  %3677 = vmatprep.mubr.f32.mxu0 %v842_v30  ;;  %6141 = vst [vmem:[#allocation7_spill] sm:$0xff] %v4590_v37  ;;  %v4606_v44 = vpack.c.bf16 %v787_v41, %v784_v40  ;;  %v796_v56 = vand.u32 4294901760, %v748_v52  ;;  %v799_v57 = vand.u32 4294901760, %v751_v53  ;;  %6154 = vst [vmem:[#allocation20_spill] sm:$0xff] %v4759_v50 }
  0x31   : > { %v4616_v51 = vpack.c.bf16 %v793_v48, %v790_v47  ;;  %v757_v59 = vsel %vm662_vm1, %v644_v55, 0  ;;  %v4631_v60 = vsub.f32 %v4508_v4, %v760_v8  ;;  %v4636_v61 = vsub.f32 %v4511_v5, %v763_v9  ;;  %v4654_v4 = vld [vmem:[%s4444_s14 + $0x10] sm:$0xff] }
  0x32   : > { %v844_v36 = vand.u32 4294901760, %v843_v33  ;;  %6142 = vst [vmem:[#allocation8_spill] sm:$0xff] %v4606_v44  ;;  %v802_v63 = vand.u32 4294901760, %v754_v58  ;;  %v805_v0 = vand.u32 4294901760, %v757_v59  ;;  %v4641_v1 = vpack.c.bf16 %v799_v57, %v796_v56  ;;  %6146 = vst [vmem:[#allocation12_spill] sm:$0xff] %v4654_v4 }
  0x33   : > { %6143 = vst [vmem:[#allocation9_spill] sm:$0xff] %v4616_v51  ;;  %v4646_v2 = vsub.f32 %v4515_v7, %v766_v11  ;;  %v4651_v3 = vsub.f32 %v4520_v10, %v769_v14  ;;  %v1003_v5 = vand.u32 4294901760, %v4631_v60  ;;  %v1010_v6 = vand.u32 4294901760, %v4636_v61  ;;  %v4678_v14 = vld [vmem:[%s4444_s14 + $0x18] sm:$0xff] }
  0x34   : > { %3509 = vmatprep.mubr.f32.mxu1 %v844_v36  ;;  %6145 = vst [vmem:[#allocation11_spill] sm:$0xff] %v4641_v1  ;;  %v667_v8 = vsel %vm662_vm1, %v4639_v62, 0  ;;  %v4662_v7 = vpack.c.bf16 %v805_v0, %v802_v63  ;;  %v670_v9 = vsel %vm662_vm1, %v4654_v4, 0  ;;  %v4675_v13 = vsub.f32 %v4539_v17, %v772_v20  ;;  %6148 = vst [vmem:[#allocation14_spill] sm:$0xff] %v4678_v14  ;;  %v4808_v62 = vld [vmem:[%s4444_s14 + $0x48] sm:$0xff] }
  0x35   : > { %3820 = vmatpush3.bf16.xpose.msra.mxu1 %v4536_v16  ;;  %3916 = vmatpush3.bf16.xpose.msra.mxu0 %v4536_v16  ;;  %v4668_v10 = vand.u32 4294901760, %v667_v8  ;;  %v6064_v11 = vand.u32 4294901760, %v4646_v2  ;;  %v6065_v12 = vand.u32 4294901760, %v4651_v3  ;;  %v1004_v23 = vsub.f32 %v4631_v60, %v1003_v5  ;;  %6163 = vst [vmem:[#allocation29_spill] sm:$0xff] %v4808_v62 }
  0x36   : > { %3822 = vmatprep.subr.bf16.mxu1 %v4565_v26  ;;  %3918 = vmatprep.subr.bf16.mxu0 %v4565_v26  ;;  %6147 = vst [vmem:[#allocation13_spill] sm:$0xff] %v4662_v7  ;;  %v1011_v24 = vsub.f32 %v4636_v61, %v1010_v6  ;;  %v4688_v30 = vsub.f32 %v4542_v18, %v775_v21  ;;  %v4706_v35 = vand.u32 4294901760, %v670_v9  ;;  %v673_v18 = vsel %vm662_vm1, %v4678_v14, 0 }
  0x37   : > { %v4693_v33 = vsub.f32 %v4568_v27, %v778_v31  ;;  %v4698_v17 = vsub.f32 %v4571_v28, %v781_v32  ;;  %v4701_v20 = vsub.f32 %v4593_v38, %v784_v40  ;;  %v4704_v34 = vsub.f32 %v4596_v39, %v787_v41  ;;  %v4715_v31 = vld [vmem:[%s4444_s14 + $0x28] sm:$0xff] }
  0x38   : > { %v676_v21 = vsel %vm662_vm1, %v4681_v22, 0  ;;  %v4712_v27 = vsub.f32 %v742_v45, %v790_v47  ;;  %6150 = vst [vmem:[#allocation16_spill] sm:$0xff] %v4715_v31  ;;  %v4719_v28 = vpack.c.bf16 %v4636_v61, %v4631_v60  ;;  %v4721_v32 = vsub.f32 %v745_v46, %v793_v48 }
  0x39   : > { %v4723_v36 = vsub.f32 %v748_v52, %v796_v56  ;;  %v4725_v38 = vsub.f32 %v751_v53, %v799_v57  ;;  %v4729_v39 = vpack.c.bf16 %v4651_v3, %v4646_v2  ;;  %v4731_v40 = vsub.f32 %v754_v58, %v802_v63  ;;  %v4762_v52 = vld [vmem:[%s4444_s14 + $0x38] sm:$0xff]  ;;  %v4790_v63 = vld [vmem:[%s4444_s14 + $0x40] sm:$0xff] }
  0x3a   : > { %v4733_v41 = vsub.f32 %v757_v59, %v805_v0  ;;  %v4737_v42 = vpack.c.bf16 %v4688_v30, %v4675_v13  ;;  %v4741_v43 = vpack.c.bf16 %v4698_v17, %v4693_v33  ;;  %v4744_v45 = vsub.f32 %v667_v8, %v4668_v10  ;;  %6155 = vst [vmem:[#allocation21_spill] sm:$0xff] %v4762_v52 }
  0x3b   : > { %v4746_v46 = vand.u32 4294901760, %v673_v18  ;;  %v679_v47 = vsel %vm662_vm1, %v4715_v31, 0  ;;  %v4752_v48 = vpack.c.bf16 %v4704_v34, %v4701_v20  ;;  %v4756_v49 = vand.u32 4294901760, %v676_v21  ;;  %6160 = vst [vmem:[#allocation26_spill] sm:$0xff] %v4790_v63 }
  0x3c   : > { %6151 = vst [vmem:[#allocation17_spill] sm:$0xff] %v4741_v43  ;;  %6152 = vst [vmem:[#allocation18_spill] sm:$0xff] %v4744_v45  ;;  %v4766_v53 = vpack.c.bf16 %v4721_v32, %v4712_v27  ;;  %v4770_v54 = vpack.c.bf16 %v4725_v38, %v4723_v36  ;;  %v4774_v55 = vpack.c.bf16 %v4733_v41, %v4731_v40  ;;  %v1005_v56 = vand.u32 4294901760, %v1004_v23 }
  0x3d   : > { %3824 = vmatpush3.bf16.xpose.msra.mxu1 %v4565_v26  ;;  %3920 = vmatpush3.bf16.xpose.msra.mxu0 %v4565_v26  ;;  %6153 = vst [vmem:[#allocation19_spill] sm:$0xff] %v4752_v48  ;;  %v1012_v57 = vand.u32 4294901760, %v1011_v24  ;;  %v4779_v58 = vsub.f32 %v670_v9, %v4706_v35  ;;  %v1018_v59 = vsub.f32 %v4646_v2, %v6064_v11  ;;  %v4787_v61 = vand.u32 4294901760, %v679_v47 }
  0x3e   : > { %3826 = vmatprep.subr.bf16.mxu1 %v4590_v37  ;;  %3922 = vmatprep.subr.bf16.mxu0 %v4590_v37  ;;  %6156 = vst [vmem:[#allocation22_spill] sm:$0xff] %v4766_v53  ;;  %6157 = vst [vmem:[#allocation23_spill] sm:$0xff] %v4770_v54  ;;  %v1025_v60 = vsub.f32 %v4651_v3, %v6065_v12  ;;  %v852_v0 = vand.u32 4294901760, %v4744_v45  ;;  %v4794_v8 = vsub.f32 %v673_v18, %v4746_v46 }
  0x3f   : > { %6158 = vst [vmem:[#allocation24_spill] sm:$0xff] %v4774_v55  ;;  %6159 = vst [vmem:[#allocation25_spill] sm:$0xff] %v4779_v58  ;;  %v682_v9 = vsel %vm662_vm1, %v4759_v50, 0  ;;  %v685_v23 = vsel %vm662_vm1, %v4762_v52, 0  ;;  %v3941_v24 = vpack.c.bf16 %v1010_v6, %v1003_v5  ;;  %v4801_v11 = vsub.f32 %v676_v21, %v4756_v49 }
  0x40   : > { %6161 = vst [vmem:[#allocation27_spill] sm:$0xff] %v4794_v8  ;;  %v3845_v12 = vpack.c.bf16 %v1012_v57, %v1005_v56  ;;  %v688_v18 = vsel %vm662_vm1, %v4790_v63, 0  ;;  %v4811_v50 = vsub.f32 %v679_v47, %v4787_v61  ;;  %v4813_v14 = vand.u32 4294901760, %v682_v9  ;;  %v4827_v63 = vld [vmem:[%s4444_s14 + $0x50] sm:$0xff] }
  0x41   : > { %6162 = vst [vmem:[#allocation28_spill] sm:$0xff] %v4801_v11  ;;  %v4815_v5 = vand.u32 4294901760, %v685_v23  ;;  %v853_v6 = vsub.f32 %v4744_v45, %v852_v0  ;;  %v1019_v21 = vand.u32 4294901760, %v1018_v59  ;;  %v1026_v56 = vand.u32 4294901760, %v1025_v60  ;;  %6166 = vst [vmem:[#allocation32_spill] sm:$0xff] %v4827_v63 }
  0x42   : > { %6164 = vst [vmem:[#allocation30_spill] sm:$0xff] %v4811_v50  ;;  %v4822_v47 = vand.u32 4294901760, %v688_v18  ;;  %v691_v22 = vsel %vm662_vm1, %v4808_v62, 0  ;;  %v6167_v59 = vand.u32 4294901760, %v4675_v13  ;;  %v1038_v57 = vand.u32 4294901760, %v4688_v30 }
  0x43   : > { %v6168_v52 = vand.u32 4294901760, %v4779_v58  ;;  %v6170_v4 = vand.u32 4294901760, %v4646_v2  ;;  %v6171_v62 = vand.u32 4294901760, %v4651_v3  ;;  %v4849_v55 = vsub.f32 %v682_v9, %v4813_v14 }
  0x44   : > { %6165 = vst [vmem:[#allocation31_spill] sm:$0xff] %v4822_v47  ;;  %v4832_v60 = vsub.f32 %v4675_v13, %v6167_v59  ;;  %v4852_v59 = vsub.f32 %v685_v23, %v4815_v5  ;;  %v854_v54 = vand.u32 4294901760, %v853_v6  ;;  %v6175_v2 = vand.u32 4294901760, %v4794_v8 }
  0x45   : > { %3828 = vmatpush3.bf16.xpose.msra.mxu1 %v4590_v37  ;;  %3924 = vmatpush3.bf16.xpose.msra.mxu0 %v4590_v37  ;;  %v863_v31 = vsub.f32 %v4779_v58, %v6168_v52  ;;  %v4845_v45 = vpack.c.bf16 %v6171_v62, %v6170_v4  ;;  %6172 = vst [vmem:[#allocation34_spill] sm:$0xff] %v4849_v55  ;;  %v4362_v52 = vmov 0   ;;  %v4860_v3 = vand.u32 4294901760, %v691_v22 }
  0x46   : > { %3830 = vmatprep.subr.bf16.mxu1 %v4606_v44  ;;  %3926 = vmatprep.subr.bf16.mxu0 %v4606_v44  ;;  %6173 = vst [vmem:[#allocation35_spill] sm:$0xff] %v4852_v59  ;;  %v873_v62 = vsub.f32 %v4794_v8, %v6175_v2  ;;  %v694_v4 = vsel %vm662_vm1, %v4827_v63, 0  ;;  %v4864_v9 = vpack.c.bf16 %v1026_v56, %v1019_v21  ;;  %v6177_v23 = vand.u32 4294901760, %v4801_v11  ;;  %v4879_v21 = vld [vmem:[%s4444_s14 + $0x68] sm:$0xff] }
  0x47   : > { %4128 = vset.pattern.permute.xlu1 %v4362_v52  ;;  %4127 = vset.pattern.permute.xlu0 %v4362_v52  ;;  %6176 = vst [vmem:[#allocation37_spill] sm:$0xff] %v4860_v3  ;;  %v4870_v52 = vsub.f32 %v688_v18, %v4822_v47  ;;  %v697_v6 = vsel %vm662_vm1, %v4839_v19, 0  ;;  %v1033_v2 = vand.u32 4294901760, %v4832_v60  ;;  %v864_v53 = vand.u32 4294901760, %v863_v31  ;;  %6178 = vst [vmem:[#allocation38_spill] sm:$0xff] %v4879_v21  ;;  %v4889_v60 = vld [vmem:[%s4454_s23 + $0x10] sm:$0xff] }
  0x48   : > { %v6179_v56 = vand.u32 4294901760, %v4811_v50  ;;  %v4886_v19 = vand.u32 4294901760, %v694_v4  ;;  %6180 = vst [vmem:[#allocation39_spill] sm:$0xff] %v4889_v60  ;;  %v4912_v31 = vld [vmem:[%s4444_s14 + $0x78] sm:$0xff]  ;;  %v6190_v47 = vand.u32 4294901760, %v4794_v8 }
  0x49   : > { %6185 = vst [vmem:[#allocation44_spill] sm:$0xff] %v4912_v31 }
  0x4d   : > { %3832 = vmatpush3.bf16.xpose.msra.mxu1 %v4606_v44  ;;  %3928 = vmatpush3.bf16.xpose.msra.mxu0 %v4606_v44  ;;  %v4896_v44 = vsub.f32 %v691_v22, %v4860_v3  ;;  %v4927_v3 = vsub.f32 %v694_v4, %v4886_v19 }
  0x4e   : > { %3834 = vmatprep.subr.bf16.mxu1 %v4616_v51  ;;  %3930 = vmatprep.subr.bf16.mxu0 %v4616_v51 }
  0x4f   : > { %6182 = vst [vmem:[#allocation41_spill] sm:$0xff] %v4896_v44  ;;  %6189 = vst [vmem:[#allocation45_spill] sm:$0xff] %v4927_v3 }
  0x55   : > { %3836 = vmatpush3.bf16.xpose.msra.mxu1 %v4616_v51  ;;  %3932 = vmatpush3.bf16.xpose.msra.mxu0 %v4616_v51  ;;  %v1039_v51 = vsub.f32 %v4688_v30, %v1038_v57  ;;  %v4892_v30 = vld [vmem:[%s4454_s23] sm:$0xff] }
  0x56   : > { %3838 = vmatprep.subr.bf16.mxu1 %v4641_v1  ;;  %3934 = vmatprep.subr.bf16.mxu0 %v4641_v1  ;;  %6181 = vst [vmem:[#allocation40_spill] sm:$0xff] %v4892_v30 }
  0x57   : > { %v1040_v22 = vand.u32 4294901760, %v1039_v51  ;;  %v6188_v51 = vand.u32 4294901760, %v4852_v59 }
  0x59   : > { %v913_v43 = vsub.f32 %v4852_v59, %v6188_v51  ;;  %v3853_v8 = vpack.c.bf16 %v1040_v22, %v1033_v2  ;;  %v6199_v2 = vand.u32 4294901760, %v4811_v50 }
  0x5d   : > { %3840 = vmatpush3.bf16.xpose.msra.mxu1 %v4641_v1  ;;  %3936 = vmatpush3.bf16.xpose.msra.mxu0 %v4641_v1  ;;  %v4855_v1 = vld [vmem:[%s4444_s14 + $0x60] sm:$0xff] }
  0x5e   : > { %3842 = vmatprep.subr.bf16.mxu1 %v4662_v7  ;;  %3938 = vmatprep.subr.bf16.mxu0 %v4662_v7  ;;  %6174 = vst [vmem:[#allocation36_spill] sm:$0xff] %v4855_v1  ;;  %v700_v63 = vsel %vm662_vm1, %v4855_v1, 0  ;;  %v874_v1 = vand.u32 4294901760, %v873_v62  ;;  %v1052_v62 = vand.u32 4294901760, %v4698_v17 }
  0x5f   : > { %v4901_v48 = vand.u32 4294901760, %v700_v63 }
  0x61   : > { %6183 = vst [vmem:[#allocation42_spill] sm:$0xff] %v4901_v48 }
  0x65   : > { %3844 = vmatpush3.bf16.xpose.msra.mxu1 %v4662_v7  ;;  %3940 = vmatpush3.bf16.xpose.msra.mxu0 %v4662_v7  ;;  %v883_v7 = vsub.f32 %v4801_v11, %v6177_v23  ;;  %v893_v23 = vsub.f32 %v4811_v50, %v6179_v56  ;;  %v4898_v56 = vand.u32 4294901760, %v697_v6  ;;  %v6201_v50 = vand.u32 4294901760, %v4852_v59 }
  0x66   : > { %3846 = vmatprep.subr.bf16.mxu1 %v3845_v12  ;;  %3942 = vmatprep.subr.bf16.mxu0 %v3941_v24 }
  0x67   : > { %v884_v29 = vand.u32 4294901760, %v883_v7  ;;  %v2047_v7 = vmul.f32 %v4889_v60, %v4889_v60  ;;  %v894_v18 = vand.u32 4294901760, %v893_v23 }
  0x69   : > { %2074 = vperm.xlu1 %4128, %v2047_v7  }
  0x6c   : > { %3510 = vmatmul.mubr.f32.vlgmr.msra.gmra.mrb[0].mxu1 %v854_v54  ;;  %3678 = vmatmul.mubr.f32.vlgmr.msra.gmra.mrb[0].mxu0 %v852_v0  ;;  %v703_v54 = vsel %vm662_vm1, %v4879_v21, 0  ;;  %v4906_v0 = vld [vmem:[%s4444_s14 + $0x70] sm:$0xff]  ;;  %v6187_v21 = vand.u32 4294901760, %v4849_v55 }
  0x6d   : > { %3848 = vmatpush3.bf16.xpose.msra.mxu1 %v3845_v12  ;;  %3944 = vmatpush3.bf16.xpose.msra.mxu0 %v3941_v24  ;;  %6184 = vst [vmem:[#allocation43_spill] sm:$0xff] %v4906_v0  ;;  %v2045_v12 = vmul.f32 %v4892_v30, %v4892_v30  ;;  %v6186_v24 = vand.u32 4294901760, %v4779_v58  ;;  %v4935_v23 = vand.u32 4294901760, %v703_v54  ;;  %v6193_v58 = vand.u32 4294901760, %v4675_v13 }
  0x6e   : > { %3850 = vmatprep.subr.bf16.mxu1 %v4864_v9  ;;  %3946 = vmatprep.subr.bf16.mxu0 %v4845_v45  ;;  %v903_v37 = vsub.f32 %v4849_v55, %v6187_v21  ;;  %v706_v21 = vsel %vm662_vm1, %v4906_v0, 0  ;;  %v709_v0 = vsel %vm662_vm1, %v4912_v31, 0  ;;  %v6196_v13 = vand.u32 4294901760, %v4693_v33 }
  0x6f   : > { %3512 = vmatprep.mubr.f32.mxu1 %v864_v53  ;;  %3680 = vmatprep.mubr.f32.mxu0 %v6186_v24  ;;  %v932_v53 = vand.u32 4294901760, %v4896_v44  ;;  %v4933_v24 = vsub.f32 %v697_v6, %v4898_v56  ;;  %6192 = vst [vmem:[#allocation47_spill] sm:$0xff] %v4935_v23  ;;  %v4941_v51 = vpack.c.bf16 %v1038_v57, %v6193_v58 }
  0x70   : > { %3513 = vmatmul.mubr.f32.gmra.mrb[2].mxu1 %v874_v1  ;;  %3681 = vmatmul.mubr.f32.gmra.mrb[2].mxu0 %v6190_v47  ;;  %v6194_v1 = vand.u32 4294901760, %v4801_v11  ;;  %v6195_v47 = vand.u32 4294901760, %v4870_v52  ;;  %v4949_v6 = vsub.f32 %v700_v63, %v4901_v48  ;;  %v1046_v58 = vsub.f32 %v4693_v33, %v6196_v13  ;;  %v4961_v63 = vld [vmem:[%s4454_s23 + $0x18] sm:$0xff]  ;;  %v4964_v48 = vld [vmem:[%s4454_s23 + $0x8] sm:$0xff] }
  0x71   : > { %6191 = vst [vmem:[#allocation46_spill] sm:$0xff] %v4933_v24  ;;  %3515 = vmatprep.mubr.f32.mxu1 %v884_v29  ;;  %v1053_v29 = vsub.f32 %v4698_v17, %v1052_v62  ;;  %2064 = vperm.xlu0 %4127, %v2045_v12   ;;  %v904_v57 = vand.u32 4294901760, %v903_v37  ;;  %v942_v11 = vand.u32 4294901760, %v4927_v3  ;;  %6197 = vst [vmem:[#allocation48_spill] sm:$0xff] %v4961_v63  ;;  %v952_v17 = vand.u32 4294901760, %v4933_v24 }
  0x72   : > { %3683 = vmatprep.mubr.f32.mxu0 %v6194_v1  ;;  %v923_v4 = vsub.f32 %v4870_v52, %v6195_v47  ;;  %v914_v1 = vand.u32 4294901760, %v913_v43  ;;  %v4958_v47 = vand.u32 4294901760, %v706_v21  ;;  %6198 = vst [vmem:[#allocation49_spill] sm:$0xff] %v4964_v48  ;;  %v933_v22 = vsub.f32 %v4896_v44, %v932_v53 }
  0x73   : > { %v4971_v7 = vsub.f32 %v703_v54, %v4935_v23  ;;  %v4973_v37 = vand.u32 4294901760, %v709_v0  ;;  %v1059_v43 = vand.u32 4294901760, %v4701_v20  ;;  %v962_v13 = vand.u32 4294901760, %v4949_v6 }
  0x74   : > { %3516 = vmatmul.mubr.f32.gmra.mrb[4].mxu1 %v894_v18  ;;  %3684 = vmatmul.mubr.f32.gmra.mrb[4].mxu0 %v6199_v2  ;;  %v1066_v18 = vand.u32 4294901760, %v4704_v34  ;;  %v924_v12 = vand.u32 4294901760, %v923_v4  ;;  %v1047_v2 = vand.u32 4294901760, %v1046_v58  ;;  %v1054_v31 = vand.u32 4294901760, %v1053_v29 }
  0x75   : > { %3852 = vmatpush3.bf16.xpose.msra.mxu1 %v4864_v9  ;;  %3948 = vmatpush3.bf16.xpose.msra.mxu0 %v4845_v45  ;;  %v2048_v54 = vmul.f32 %v4961_v63, %v4961_v63  ;;  %v2046_v9 = vmul.f32 %v4964_v48, %v4964_v48  ;;  %v6200_v45 = vand.u32 4294901760, %v4849_v55  ;;  %v943_v44 = vsub.f32 %v4927_v3, %v942_v11  ;;  %v5007_v55 = vld [vmem:[%s4454_s23 + $0x28] sm:$0xff] }
  0x76   : > { %3854 = vmatprep.subr.bf16.mxu1 %v3853_v8  ;;  %3950 = vmatprep.subr.bf16.mxu0 %v4941_v51  ;;  %v4989_v4 = vsub.f32 %v706_v21, %v4958_v47  ;;  %v934_v58 = vand.u32 4294901760, %v933_v22  ;;  %v953_v29 = vsub.f32 %v4933_v24, %v952_v17  ;;  %v972_v23 = vand.u32 4294901760, %v4971_v7  ;;  %6204 = vst [vmem:[#allocation50_spill] sm:$0xff] %v5007_v55 }
  0x77   : > { %3518 = vmatprep.mubr.f32.mxu1 %v904_v57  ;;  %3686 = vmatprep.mubr.f32.mxu0 %v6200_v45  ;;  %v4996_v57 = vsub.f32 %v709_v0, %v4973_v37  ;;  %v6202_v45 = vand.u32 4294901760, %v4693_v33  ;;  %v6203_v21 = vand.u32 4294901760, %v4870_v52  ;;  %v1060_v22 = vsub.f32 %v4701_v20, %v1059_v43  ;;  %v5010_v33 = vld [vmem:[%s4454_s23 + $0x20] sm:$0xff] }
  0x78   : > { %3519 = vmatmul.mubr.f32.gmra.mrb[6].mxu1 %v914_v1  ;;  %3687 = vmatmul.mubr.f32.gmra.mrb[6].mxu0 %v6201_v50  ;;  %v963_v1 = vsub.f32 %v4949_v6, %v962_v13  ;;  %v3857_v50 = vpack.c.bf16 %v1054_v31, %v1047_v2  ;;  %v1067_v59 = vsub.f32 %v4704_v34, %v1066_v18  ;;  %v944_v24 = vand.u32 4294901760, %v943_v44 }
  0x79   : > { %v3953_v3 = vpack.c.bf16 %v1052_v62, %v6202_v45  ;;  %3521 = vmatprep.mubr.f32.mxu1 %v924_v12  ;;  %3689 = vmatprep.mubr.f32.mxu0 %v6203_v21  ;;  %v982_v0 = vand.u32 4294901760, %v4989_v4  ;;  %6205 = vst [vmem:[#allocation51_spill] sm:$0xff] %v5010_v33  ;;  %v954_v62 = vand.u32 4294901760, %v953_v29  ;;  %v973_v12 = vsub.f32 %v4971_v7, %v972_v23 }
  0x7a   : > { %2079 = vperm.xlu1 %4128, %v2048_v54   ;;  %2069 = vperm.xlu0 %4127, %v2046_v9   ;;  %v992_v31 = vand.u32 4294901760, %v4996_v57  ;;  %v1073_v20 = vand.u32 4294901760, %v4712_v27  ;;  %v1080_v44 = vand.u32 4294901760, %v4721_v32  ;;  %v964_v34 = vand.u32 4294901760, %v963_v1  ;;  %v5029_v1 = vld [vmem:[%s4454_s23 + $0x30] sm:$0xff] }
  0x7b   : > { %v1061_v2 = vand.u32 4294901760, %v1060_v22  ;;  %v1068_v54 = vand.u32 4294901760, %v1067_v59  ;;  %v2049_v9 = vmul.f32 %v5010_v33, %v5010_v33  ;;  %v3957_v21 = vpack.c.bf16 %v1066_v18, %v1059_v43  ;;  %6207 = vst [vmem:[#allocation53_spill] sm:$0xff] %v5029_v1 }
  0x7c   : > { %3522 = vmatmul.mubr.f32.gmra.mrb[8].mxu1 %v934_v58  ;;  %3690 = vmatmul.mubr.f32.gmra.mrb[8].mxu0 %v932_v53  ;;  %v2050_v53 = vmul.f32 %v5007_v55, %v5007_v55  ;;  %v993_v58 = vsub.f32 %v4996_v57, %v992_v31  ;;  %v1074_v29 = vsub.f32 %v4712_v27, %v1073_v20  ;;  %v1087_v43 = vand.u32 4294901760, %v4723_v36 }
  0x7d   : > { %3856 = vmatpush3.bf16.xpose.msra.mxu1 %v3853_v8  ;;  %3952 = vmatpush3.bf16.xpose.msra.mxu0 %v4941_v51  ;;  %v983_v8 = vsub.f32 %v4989_v4, %v982_v0  ;;  %v974_v51 = vand.u32 4294901760, %v973_v12  ;;  %v1081_v59 = vsub.f32 %v4721_v32, %v1080_v44  ;;  %v3861_v45 = vpack.c.bf16 %v1068_v54, %v1061_v2 }
  0x7e   : > { %3858 = vmatprep.subr.bf16.mxu1 %v3857_v50  ;;  %3954 = vmatprep.subr.bf16.mxu0 %v3953_v3  ;;  %v1075_v27 = vand.u32 4294901760, %v1074_v29  ;;  %v1094_v18 = vand.u32 4294901760, %v4725_v38  ;;  %v2051_v22 = vmul.f32 %v5029_v1, %v5029_v1  ;;  %v1088_v12 = vsub.f32 %v4723_v36, %v1087_v43 }
  0x7f   : > { %3524 = vmatprep.mubr.f32.mxu1 %v944_v24  ;;  %3692 = vmatprep.mubr.f32.mxu0 %v942_v11  ;;  %v984_v24 = vand.u32 4294901760, %v983_v8  ;;  %v5026_v11 = vld [vmem:[%s4454_s23 + $0x38] sm:$0xff]  ;;  %v1082_v32 = vand.u32 4294901760, %v1081_v59  ;;  %v1101_v2 = vand.u32 4294901760, %v4731_v40  ;;  %v1108_v54 = vand.u32 4294901760, %v4733_v41  ;;  %v5064_v8 = vld [vmem:[%s4454_s23 + $0x68] sm:$0xff] }
  0x80   : > { %3525 = vmatmul.mubr.f32.gmra.mrb[10].mxu1 %v954_v62  ;;  %3693 = vmatmul.mubr.f32.gmra.mrb[10].mxu0 %v952_v17  ;;  %6206 = vst [vmem:[#allocation52_spill] sm:$0xff] %v5026_v11  ;;  %v994_v17 = vand.u32 4294901760, %v993_v58  ;;  %v1089_v36 = vand.u32 4294901760, %v1088_v12  ;;  %6212 = vst [vmem:[#allocation58_spill] sm:$0xff] %v5064_v8  ;;  %v3965_v29 = vpack.c.bf16 %v1094_v18, %v1087_v43  ;;  %v6225_v12 = vld [vmem:[#allocation22_spill] sm:$0xff] }
  0x81   : > { %3527 = vmatprep.mubr.f32.mxu1 %v964_v34  ;;  %3695 = vmatprep.mubr.f32.mxu0 %v962_v13  ;;  %v2052_v13 = vmul.f32 %v5026_v11, %v5026_v11  ;;  %v3865_v62 = vpack.c.bf16 %v1082_v32, %v1075_v27  ;;  %v1095_v34 = vsub.f32 %v4725_v38, %v1094_v18  ;;  %v5079_v27 = vld [vmem:[%s4454_s23 + $0x70] sm:$0xff] }
  0x82   : > { %2089 = vperm.xlu1 %4128, %v2050_v53   ;;  %2084 = vperm.xlu0 %4127, %v2049_v9   ;;  %v1102_v59 = vsub.f32 %v4731_v40, %v1101_v2  ;;  %6215 = vst [vmem:[#allocation61_spill] sm:$0xff] %v5079_v27  ;;  %v2059_v43 = vmul.f32 %v5079_v27, %v5079_v27 }
  0x83   : > { %v1096_v38 = vand.u32 4294901760, %v1095_v34  ;;  %v6226_v34 = vld [vmem:[#allocation9_spill] sm:$0xff] }
  0x84   : > { %3528 = vmatmul.mubr.f32.gmra.mrb[12].mxu1 %v974_v51  ;;  %3696 = vmatmul.mubr.f32.gmra.mrb[12].mxu0 %v972_v23  ;;  %v5041_v23 = vld [vmem:[%s4454_s23 + $0x40] sm:$0xff]  ;;  %v1103_v32 = vand.u32 4294901760, %v1102_v59 }
  0x85   : > { %3860 = vmatpush3.bf16.xpose.msra.mxu1 %v3857_v50  ;;  %3956 = vmatpush3.bf16.xpose.msra.mxu0 %v3953_v3  ;;  %v5038_v3 = vld [vmem:[%s4454_s23 + $0x48] sm:$0xff]  ;;  %6209 = vst [vmem:[#allocation55_spill] sm:$0xff] %v5041_v23  ;;  %v3961_v50 = vpack.c.bf16 %v1080_v44, %v1073_v20  ;;  %v5052_v20 = vld [vmem:[%s4454_s23 + $0x58] sm:$0xff]  ;;  %v5055_v44 = vld [vmem:[%s4454_s23 + $0x50] sm:$0xff]  ;;  %v3869_v58 = vpack.c.bf16 %v1096_v38, %v1089_v36 }
  0x86   : > { %3862 = vmatprep.subr.bf16.mxu1 %v3861_v45  ;;  %3958 = vmatprep.subr.bf16.mxu0 %v3957_v21  ;;  %6208 = vst [vmem:[#allocation54_spill] sm:$0xff] %v5038_v3  ;;  %6210 = vst [vmem:[#allocation56_spill] sm:$0xff] %v5052_v20  ;;  %v2056_v53 = vmul.f32 %v5052_v20, %v5052_v20  ;;  %v2055_v9 = vmul.f32 %v5055_v44, %v5055_v44  ;;  %v5067_v51 = vld [vmem:[%s4454_s23 + $0x60] sm:$0xff]  ;;  %v6231_v38 = vld [vmem:[#allocation18_spill] sm:$0xff] }
  0x87   : > { %3530 = vmatprep.mubr.f32.mxu1 %v984_v24  ;;  %3698 = vmatprep.mubr.f32.mxu0 %v982_v0  ;;  %v2054_v0 = vmul.f32 %v5038_v3, %v5038_v3  ;;  %6211 = vst [vmem:[#allocation57_spill] sm:$0xff] %v5055_v44  ;;  %6213 = vst [vmem:[#allocation59_spill] sm:$0xff] %v5067_v51  ;;  %v2057_v24 = vmul.f32 %v5067_v51, %v5067_v51  ;;  %v6230_v36 = vld [vmem:[#allocation13_spill] sm:$0xff] }
  0x88   : > { %3531 = vmatmul.mubr.f32.gmra.mrb[14].mxu1 %v994_v17  ;;  %3699 = vmatmul.mubr.f32.gmra.mrb[14].mxu0 %v992_v31  ;;  %v2053_v31 = vmul.f32 %v5041_v23, %v5041_v23  ;;  %v5076_v17 = vld [vmem:[%s4454_s23 + $0x78] sm:$0xff]  ;;  %s3279_s23 = sshll.u32 %s4347_s25, 7 }
  0x89   : > { %3565 = vmatprep.mubr.f32.mxu1 %v4559_v25  ;;  %3733 = vmatprep.mubr.f32.mxu0 %v4559_v25  ;;  %6214 = vst [vmem:[#allocation60_spill] sm:$0xff] %v5076_v17 }
  0x8a   : > { %2099 = vperm.xlu1 %4128, %v2052_v13   ;;  %2094 = vperm.xlu0 %4127, %v2051_v22   ;;  %v3969_v13 = vpack.c.bf16 %v1108_v54, %v1101_v2  ;;  %v6220_v22 = vld [vmem:[#allocation42_spill] sm:$0xff]  ;;  %v6232_v2 = vld [vmem:[#allocation25_spill] sm:$0xff] }
  0x8d   : > { %3864 = vmatpush3.bf16.xpose.msra.mxu1 %v3861_v45  ;;  %3960 = vmatpush3.bf16.xpose.msra.mxu0 %v3957_v21  ;;  %v1109_v45 = vsub.f32 %v4733_v41, %v1108_v54  ;;  %v2058_v21 = vmul.f32 %v5064_v8, %v5064_v8  ;;  %v2060_v41 = vmul.f32 %v5076_v17, %v5076_v17  ;;  %v6233_v54 = vld [vmem:[#allocation27_spill] sm:$0xff] }
  0x8e   : > { %3866 = vmatprep.subr.bf16.mxu1 %v3865_v62  ;;  %3962 = vmatprep.subr.bf16.mxu0 %v3961_v50 }
  0x8f   : > { %2109 = vperm.xlu1 %4128, %v2054_v0   ;;  %2104 = vperm.xlu0 %4127, %v2053_v31   ;;  %v1110_v40 = vand.u32 4294901760, %v1109_v45  ;;  %v6227_v0 = vld [vmem:[#allocation23_spill] sm:$0xff] }
  0x90   : > { %v6228_v31 = vld [vmem:[#allocation11_spill] sm:$0xff] }
  0x91   : > { %v3873_v18 = vpack.c.bf16 %v1110_v40, %v1103_v32 }
  0x93   : > { %2119 = vperm.xlu1 %4128, %v2056_v53   ;;  %2114 = vperm.xlu0 %4127, %v2055_v9   ;;  %v6234_v53 = vld [vmem:[#allocation28_spill] sm:$0xff]  ;;  %v6235_v9 = vld [vmem:[#allocation30_spill] sm:$0xff] }
  0x95   : > { %3868 = vmatpush3.bf16.xpose.msra.mxu1 %v3865_v62  ;;  %3964 = vmatpush3.bf16.xpose.msra.mxu0 %v3961_v50  ;;  %v6223_v50 = vld [vmem:[#allocation8_spill] sm:$0xff]  ;;  %v6224_v62 = vld [vmem:[#allocation6_spill] sm:$0xff] }
  0x96   : > { %3870 = vmatprep.subr.bf16.mxu1 %v3869_v58  ;;  %3966 = vmatprep.subr.bf16.mxu0 %v3965_v29 }
  0x97   : > { %2129 = vperm.xlu1 %4128, %v2058_v21   ;;  %2124 = vperm.xlu0 %4127, %v2057_v24  }
  0x9b   : > { %2139 = vperm.xlu1 %4128, %v2060_v41   ;;  %2134 = vperm.xlu0 %4127, %v2059_v43  }
  0x9d   : > { %3872 = vmatpush3.bf16.xpose.msra.mxu1 %v3869_v58  ;;  %3968 = vmatpush3.bf16.xpose.msra.mxu0 %v3965_v29  ;;  %v6236_v58 = vld [vmem:[#allocation34_spill] sm:$0xff] }
  0x9e   : > { %3874 = vmatprep.subr.bf16.mxu1 %v3873_v18  ;;  %3970 = vmatprep.subr.bf16.mxu0 %v3969_v13 }
  0x9f   : > { %2331 = vperm.xlu1 %4128, %v4964_v48   ;;  %2326 = vperm.xlu0 %4127, %v4892_v30  }
  0xa3   : > { %2341 = vperm.xlu1 %4128, %v4961_v63   ;;  %2336 = vperm.xlu0 %4127, %v4889_v60  }
  0xa5   : > { %3876 = vmatpush3.bf16.xpose.msra.mxu1 %v3873_v18  ;;  %3972 = vmatpush3.bf16.xpose.msra.mxu0 %v3969_v13  ;;  %v6116_v13 = vlaneseq }
  0xa6   : > { %3878 = vmatprep.subr.bf16.mxu1 %v4719_v28  ;;  %3974 = vmatprep.subr.bf16.mxu0 %v4530_v15 }
  0xa7   : > { %2351 = vperm.xlu1 %4128, %v5007_v55   ;;  %2346 = vperm.xlu0 %4127, %v5010_v33  }
  0xab   : > { %2361 = vperm.xlu1 %4128, %v5026_v11   ;;  %2356 = vperm.xlu0 %4127, %v5029_v1  }
  0xac   : > { %3566 = vmatmul.mubr.f32.vlgmr.msra.gmra.mrb[0].mxu1 %v4668_v10  ;;  %3734 = vmatmul.mubr.f32.vlgmr.msra.gmra.mrb[0].mxu0 %v4668_v10 }
  0xad   : > { %3880 = vmatpush3.bf16.xpose.msra.mxu1 %v4719_v28  ;;  %3976 = vmatpush3.bf16.xpose.msra.mxu0 %v4530_v15  ;;  %v6216_v15 = vld [vmem:[#allocation31_spill] sm:$0xff]  ;;  %v6218_v28 = vld [vmem:[#allocation17_spill] sm:$0xff] }
  0xae   : > { %3882 = vmatprep.subr.bf16.mxu1 %v4729_v39  ;;  %3978 = vmatprep.subr.bf16.mxu0 %v4536_v16 }
  0xaf   : > { %3568 = vmatprep.mubr.f32.mxu1 %v4706_v35  ;;  %3736 = vmatprep.mubr.f32.mxu0 %v4706_v35 }
  0xb0   : > { %3569 = vmatmul.mubr.f32.gmra.mrb[2].mxu1 %v4746_v46  ;;  %3737 = vmatmul.mubr.f32.gmra.mrb[2].mxu0 %v4746_v46 }
  0xb1   : > { %3571 = vmatprep.mubr.f32.mxu1 %v4756_v49  ;;  %3739 = vmatprep.mubr.f32.mxu0 %v4756_v49 }
  0xb2   : > { %2371 = vperm.xlu1 %4128, %v5038_v3   ;;  %2366 = vperm.xlu0 %4127, %v5041_v23  }
  0xb4   : > { %3572 = vmatmul.mubr.f32.gmra.mrb[4].mxu1 %v4787_v61  ;;  %3740 = vmatmul.mubr.f32.gmra.mrb[4].mxu0 %v4787_v61 }
  0xb5   : > { %3884 = vmatpush3.bf16.xpose.msra.mxu1 %v4729_v39  ;;  %3980 = vmatpush3.bf16.xpose.msra.mxu0 %v4536_v16  ;;  %v6217_v16 = vld [vmem:[#allocation37_spill] sm:$0xff]  ;;  %v6219_v39 = vld [vmem:[#allocation7_spill] sm:$0xff] }
  0xb6   : > { %3886 = vmatprep.subr.bf16.mxu1 %v4737_v42  ;;  %3982 = vmatprep.subr.bf16.mxu0 %v4565_v26 }
  0xb7   : > { %3574 = vmatprep.mubr.f32.mxu1 %v4813_v14  ;;  %3742 = vmatprep.mubr.f32.mxu0 %v4813_v14 }
  0xb8   : > { %3575 = vmatmul.mubr.f32.gmra.mrb[6].mxu1 %v4815_v5  ;;  %3743 = vmatmul.mubr.f32.gmra.mrb[6].mxu0 %v4815_v5 }
  0xb9   : > { %3577 = vmatprep.mubr.f32.mxu1 %v6216_v15  ;;  %3745 = vmatprep.mubr.f32.mxu0 %v6216_v15 }
  0xba   : > { %2381 = vperm.xlu1 %4128, %v5052_v20   ;;  %2376 = vperm.xlu0 %4127, %v5055_v44  }
  0xbc   : > { %3578 = vmatmul.mubr.f32.gmra.mrb[8].mxu1 %v6217_v16  ;;  %3746 = vmatmul.mubr.f32.gmra.mrb[8].mxu0 %v6217_v16 }
  0xbd   : > { %3888 = vmatpush3.bf16.xpose.msra.mxu1 %v4737_v42  ;;  %3984 = vmatpush3.bf16.xpose.msra.mxu0 %v4565_v26  ;;  %v6221_v26 = vld [vmem:[#allocation47_spill] sm:$0xff] }
  0xbe   : > { %3890 = vmatprep.subr.bf16.mxu1 %v6218_v28  ;;  %3986 = vmatprep.subr.bf16.mxu0 %v6219_v39  ;;  %v6222_v42 = vld [vmem:[#allocation19_spill] sm:$0xff] }
  0xbf   : > { %3580 = vmatprep.mubr.f32.mxu1 %v4886_v19  ;;  %3748 = vmatprep.mubr.f32.mxu0 %v4886_v19 }
  0xc0   : > { %3581 = vmatmul.mubr.f32.gmra.mrb[10].mxu1 %v4898_v56  ;;  %3749 = vmatmul.mubr.f32.gmra.mrb[10].mxu0 %v4898_v56 }
  0xc1   : > { %3583 = vmatprep.mubr.f32.mxu1 %v6220_v22  ;;  %3751 = vmatprep.mubr.f32.mxu0 %v6220_v22 }
  0xc2   : > { %2391 = vperm.xlu1 %4128, %v5064_v8   ;;  %2386 = vperm.xlu0 %4127, %v5067_v51  }
  0xc4   : > { %3584 = vmatmul.mubr.f32.gmra.mrb[12].mxu1 %v6221_v26  ;;  %3752 = vmatmul.mubr.f32.gmra.mrb[12].mxu0 %v6221_v26 }
  0xc5   : > { %3892 = vmatpush3.bf16.xpose.msra.mxu1 %v6218_v28  ;;  %3988 = vmatpush3.bf16.xpose.msra.mxu0 %v6219_v39 }
  0xc6   : > { %3894 = vmatprep.subr.bf16.mxu1 %v6222_v42  ;;  %3990 = vmatprep.subr.bf16.mxu0 %v6223_v50 }
  0xc7   : > { %3586 = vmatprep.mubr.f32.mxu1 %v4958_v47  ;;  %3754 = vmatprep.mubr.f32.mxu0 %v4958_v47 }
  0xc8   : > { %3587 = vmatmul.mubr.f32.gmra.mrb[14].mxu1 %v4973_v37  ;;  %3755 = vmatmul.mubr.f32.gmra.mrb[14].mxu0 %v4973_v37 }
  0xc9   : > { %3621 = vmatprep.mubr.f32.mxu1 %v6224_v62  ;;  %3789 = vmatprep.mubr.f32.mxu0 %v4559_v25  ;;  %v6229_v25 = vld [vmem:[#allocation24_spill] sm:$0xff] }
  0xca   : > { %2401 = vperm.xlu1 %4128, %v5076_v17   ;;  %2396 = vperm.xlu0 %4127, %v5079_v27  }
  0xcd   : > { %3896 = vmatpush3.bf16.xpose.msra.mxu1 %v6222_v42  ;;  %3992 = vmatpush3.bf16.xpose.msra.mxu0 %v6223_v50 }
  0xce   : > { %3898 = vmatprep.subr.bf16.mxu1 %v6225_v12  ;;  %3994 = vmatprep.subr.bf16.mxu0 %v6226_v34 }
  0xd5   : > { %3900 = vmatpush3.bf16.xpose.msra.mxu1 %v6225_v12  ;;  %3996 = vmatpush3.bf16.xpose.msra.mxu0 %v6226_v34 }
  0xd6   : > { %3902 = vmatprep.subr.bf16.mxu1 %v6227_v0  ;;  %3998 = vmatprep.subr.bf16.mxu0 %v6228_v31 }
  0xdd   : > { %3904 = vmatpush3.bf16.xpose.msra.mxu1 %v6227_v0  ;;  %4000 = vmatpush3.bf16.xpose.msra.mxu0 %v6228_v31 }
  0xde   : > { %3906 = vmatprep.subr.bf16.mxu1 %v6229_v25  ;;  %4002 = vmatprep.subr.bf16.mxu0 %v6230_v36 }
  0xe5   : > { %3908 = vmatpush3.bf16.xpose.msra.mxu1 %v6229_v25  ;;  %4004 = vmatpush3.bf16.xpose.msra.mxu0 %v6230_v36 }
  0xec   : > { %3622 = vmatmul.mubr.f32.vlgmr.msra.gmra.mrb[0].mxu1 %v6231_v38  ;;  %3790 = vmatmul.mubr.f32.vlgmr.msra.gmra.mrb[0].mxu0 %v4668_v10  ;;  %v6237_v10 = vld [vmem:[#allocation35_spill] sm:$0xff] }
  0xed   : > { %3624 = vmatprep.mubr.f32.mxu1 %v6232_v2  ;;  %3792 = vmatprep.mubr.f32.mxu0 %v4706_v35  ;;  %v6238_v35 = vld [vmem:[#allocation41_spill] sm:$0xff] }
  0xf0   : > { %3625 = vmatmul.mubr.f32.gmra.mrb[2].mxu1 %v6233_v54  ;;  %3793 = vmatmul.mubr.f32.gmra.mrb[2].mxu0 %v4746_v46  ;;  %v6239_v46 = vld [vmem:[#allocation45_spill] sm:$0xff] }
  0xf1   : > { %3627 = vmatprep.mubr.f32.mxu1 %v6234_v53  ;;  %3795 = vmatprep.mubr.f32.mxu0 %v4756_v49  ;;  %v6240_v49 = vld [vmem:[#allocation46_spill] sm:$0xff] }
  0xf4   : > { %3628 = vmatmul.mubr.f32.gmra.mrb[4].mxu1 %v6235_v9  ;;  %3796 = vmatmul.mubr.f32.gmra.mrb[4].mxu0 %v4787_v61 }
  0xf5   : > { %3630 = vmatprep.mubr.f32.mxu1 %v6236_v58  ;;  %3798 = vmatprep.mubr.f32.mxu0 %v4813_v14  ;;  %v5197_v14 = vpop.permute.xlu0 %2064 }
  0xf8   : > { %3631 = vmatmul.mubr.f32.gmra.mrb[6].mxu1 %v6237_v10  ;;  %3799 = vmatmul.mubr.f32.gmra.mrb[6].mxu0 %v4815_v5 }
  0xf9   : > { %3633 = vmatprep.mubr.f32.mxu1 %v4870_v52  ;;  %3801 = vmatprep.mubr.f32.mxu0 %v6216_v15  ;;  %v5201_v5 = vpop.permute.xlu0 %2069  ;;  %v5228_v15 = vshrl.u32 %v6116_v13, 7 }
  0xfb   : > { %v2145_v39 = vsub.s32 0, %v5228_v15 }
  0xfc   : > { %3634 = vmatmul.mubr.f32.gmra.mrb[8].mxu1 %v6238_v35  ;;  %3802 = vmatmul.mubr.f32.gmra.mrb[8].mxu0 %v6217_v16 }
  0xfd   : > { %3636 = vmatprep.mubr.f32.mxu1 %v6239_v46  ;;  %3804 = vmatprep.mubr.f32.mxu0 %v4886_v19  ;;  %v5195_v19 = vpop.permute.xlu1 %2074 }
 0x100   : > { %3637 = vmatmul.mubr.f32.gmra.mrb[10].mxu1 %v6240_v49  ;;  %3805 = vmatmul.mubr.f32.gmra.mrb[10].mxu0 %v4898_v56 }
 0x101   : > { %3639 = vmatprep.mubr.f32.mxu1 %v4949_v6  ;;  %3807 = vmatprep.mubr.f32.mxu0 %v6220_v22  ;;  %v5199_v61 = vpop.permute.xlu1 %2079  ;;  %v5205_v56 = vpop.permute.xlu0 %2084 }
 0x104   : > { %3640 = vmatmul.mubr.f32.gmra.mrb[12].mxu1 %v4971_v7  ;;  %3808 = vmatmul.mubr.f32.gmra.mrb[12].mxu0 %v6221_v26  ;;  %v661_v26 = vld [vmem:[%s547_s20] sm:$0x1] }
 0x105   : > { %3642 = vmatprep.mubr.f32.mxu1 %v4989_v4  ;;  %3810 = vmatprep.mubr.f32.mxu0 %v4958_v47  ;;  %v5203_v52 = vpop.permute.xlu1 %2089  ;;  %v5236_v50 = vrot.slane %v661_v26, %v2145_v39 }
 0x108   : > { %3643 = vmatmul.mubr.f32.gmra.mrb[14].mxu1 %v4996_v57  ;;  %3811 = vmatmul.mubr.f32.gmra.mrb[14].mxu0 %v4973_v37 }
 0x109   : > { %v5207_v6 = vpop.permute.xlu1 %2099  ;;  %v5209_v7 = vpop.permute.xlu0 %2094 }
 0x10e   : > { %v5211_v47 = vpop.permute.xlu1 %2109  ;;  %v5213_v4 = vpop.permute.xlu0 %2104 }
 0x112   : > { %v5215_v37 = vpop.permute.xlu1 %2119  ;;  %v5217_v57 = vpop.permute.xlu0 %2114 }
 0x116   : > { %v5219_v29 = vpop.permute.xlu1 %2129  ;;  %v5221_v59 = vpop.permute.xlu0 %2124 }
 0x11a   : > { %v5223_v45 = vpop.permute.xlu1 %2139  ;;  %v5225_v21 = vpop.permute.xlu0 %2134 }
 0x11e   : > { %v2332_v24 = vpop.permute.xlu1 %2331  ;;  %v2327_v32 = vpop.permute.xlu0 %2326 }
 0x11f   : > { %v2411_v62 = vsub.f32 %v2332_v24, %v5236_v50  ;;  %v2410_v34 = vsub.f32 %v2327_v32, %v5236_v50 }
 0x121   : > { %v2427_v36 = vand.u32 2147483647, %v2411_v62  ;;  %v2426_v2 = vand.u32 2147483647, %v2410_v34 }
 0x122   : > { %v2342_v40 = vpop.permute.xlu1 %2341  ;;  %v2337_v41 = vpop.permute.xlu0 %2336 }
 0x123   : > { %v2413_v31 = vsub.f32 %v2342_v40, %v5236_v50  ;;  %v2412_v25 = vsub.f32 %v2337_v41, %v5236_v50  ;;  %v2459_v49 = vmax.f32 %v2427_v36, 1e-16  ;;  %v2458_v40 = vmax.f32 %v2426_v2, 1e-16 }
 0x125   : > { %v2429_v53 = vand.u32 2147483647, %v2413_v31  ;;  %v2428_v10 = vand.u32 2147483647, %v2412_v25  ;;  %4129 = vrcp.f32 %v2459_v49 }
 0x126   : > { %v2352_v43 = vpop.permute.xlu1 %2351  ;;  %v2347_v18 = vpop.permute.xlu0 %2346  ;;  %4131 = vrcp.f32 %v2458_v40 }
 0x127   : > { %v2415_v38 = vsub.f32 %v2352_v43, %v5236_v50  ;;  %v2414_v54 = vsub.f32 %v2347_v18, %v5236_v50  ;;  %v2061_v43 = vmul.f32 %v661_v26, %v661_v26  ;;  %v2461_v34 = vmax.f32 %v2429_v53, 1e-16 }
 0x128   : > { %v2460_v31 = vmax.f32 %v2428_v10, 1e-16 }
 0x129   : > { %v2431_v24 = vand.u32 2147483647, %v2415_v38  ;;  %v2430_v41 = vand.u32 2147483647, %v2414_v54  ;;  %v5252_v54 = vrot.slane %v2061_v43, %v2145_v39  ;;  %4133 = vrcp.f32 %v2461_v34 }
 0x12a   : > { %v2362_v16 = vpop.permute.xlu1 %2361  ;;  %v2357_v28 = vpop.permute.xlu0 %2356  ;;  %4135 = vrcp.f32 %v2460_v31 }
 0x12b   : > { %v2417_v9 = vsub.f32 %v2362_v16, %v5236_v50  ;;  %v2416_v35 = vsub.f32 %v2357_v28, %v5236_v50  ;;  %v2463_v28 = vmax.f32 %v2431_v24, 1e-16  ;;  %v5258_v39 = vadd.f32 %v5252_v54, %v5195_v19 }
 0x12c   : > { %v5270_v19 = vadd.f32 %v5252_v54, %v5201_v5  ;;  %v5288_v5 = vadd.f32 %v5252_v54, %v5209_v7  ;;  %v5306_v7 = vadd.f32 %v5252_v54, %v5215_v37 }
 0x12d   : > { %v2433_v13 = vand.u32 2147483647, %v2417_v9  ;;  %v2432_v16 = vand.u32 2147483647, %v2416_v35  ;;  %4137 = vrcp.f32 %v2463_v28 }
 0x12f   : > { %v2464_v9 = vmax.f32 %v2432_v16, 1e-16  ;;  %v5276_v34 = vpop.eup %4129  ;;  %v5298_v16 = vadd.f32 %v5252_v54, %v5213_v4  ;;  %v5316_v4 = vadd.f32 %v5252_v54, %v5219_v29  ;;  %v5329_v29 = vadd.f32 %v5252_v54, %v5221_v59 }
 0x130   : > { %v5290_v31 = vpop.eup %4131 }
 0x131   : > { %v2372_v22 = vpop.permute.xlu1 %2371  ;;  %v2367_v42 = vpop.permute.xlu0 %2366 }
 0x132   : > { %v2419_v32 = vsub.f32 %v2372_v22, %v5236_v50  ;;  %v2418_v62 = vsub.f32 %v2367_v42, %v5236_v50  ;;  %v2462_v22 = vmax.f32 %v2430_v41, 1e-16 }
 0x134   : > { %v2435_v27 = vand.u32 2147483647, %v2419_v32  ;;  %v2434_v2 = vand.u32 2147483647, %v2418_v62  ;;  %4139 = vrcp.f32 %v2462_v22  ;;  %v2541_v22 = vadd.s32 8, %v5228_v15 }
 0x136   : > { %v2467_v35 = vmax.f32 %v2435_v27, 1e-16  ;;  %v2466_v24 = vmax.f32 %v2434_v2, 1e-16  ;;  %v5266_v27 = vadd.f32 %v5252_v54, %v5199_v61  ;;  %v5280_v61 = vadd.f32 %v5252_v54, %v5205_v56 }
 0x137   : > { %v6241_v2 = vlaneseq }
 0x139   : > { %v2382_v12 = vpop.permute.xlu1 %2381  ;;  %v2377_v0 = vpop.permute.xlu0 %2376  ;;  %v2575_v37 = vand.u32 127, %v6241_v2  ;;  %v2544_v2 = vadd.s32 32, %v5228_v15 }
 0x13a   : > { %v2421_v18 = vsub.f32 %v2382_v12, %v5236_v50  ;;  %v2420_v25 = vsub.f32 %v2377_v0, %v5236_v50  ;;  %v2465_v12 = vmax.f32 %v2433_v13, 1e-16 }
 0x13c   : > { %v2437_v53 = vand.u32 2147483647, %v2421_v18  ;;  %v2436_v0 = vand.u32 2147483647, %v2420_v25  ;;  %4141 = vrcp.f32 %v2465_v12  ;;  %v5284_v18 = vadd.f32 %v5252_v54, %v5207_v6  ;;  %v5302_v6 = vpop.eup %4133 }
 0x13d   : > { %4143 = vrcp.f32 %v2464_v9  ;;  %v5310_v25 = vadd.f32 %v5252_v54, %v5217_v57  ;;  %v5312_v28 = vpop.eup %4135  ;;  %v2576_v9 = vstv %s3280_s13 }
 0x13e   : > { %v2469_v13 = vmax.f32 %v2437_v53, 1e-16  ;;  %v2468_v40 = vmax.f32 %v2436_v0, 1e-16  ;;  %4145 = vrcp.f32 %v2467_v35  ;;  %v5322_v53 = vstv %s3279_s23 }
 0x13f   : > { %4147 = vrcp.f32 %v2466_v24  ;;  %v2543_v0 = vadd.s32 24, %v5228_v15  ;;  %v5336_v24 = vadd.f32 %v5252_v54, %v5223_v45  ;;  %v5351_v45 = vadd.s32 %v5322_v53, %v5228_v15 }
 0x140   : > { %4149 = vrcp.f32 %v2469_v13  ;;  %v5384_v44 = vadd.s32 %v5322_v53, %v2544_v2 }
 0x141   : > { %v2392_v58 = vpop.permute.xlu1 %2391  ;;  %v2387_v46 = vpop.permute.xlu0 %2386  ;;  %4151 = vrcp.f32 %v2468_v40 }
 0x142   : > { %v2423_v36 = vsub.f32 %v2392_v58, %v5236_v50  ;;  %v2422_v42 = vsub.f32 %v2387_v46, %v5236_v50  ;;  %v5262_v46 = vadd.f32 %v5252_v54, %v5197_v14  ;;  %v5274_v14 = vadd.f32 %v5252_v54, %v5203_v52 }
 0x143   : > { %v5294_v52 = vadd.f32 %v5252_v54, %v5211_v47 }
 0x144   : > { %v2439_v58 = vand.u32 2147483647, %v2423_v36  ;;  %v2438_v32 = vand.u32 2147483647, %v2422_v42  ;;  %v5320_v42 = vpop.eup %4137 }
 0x146   : > { %v2470_v43 = vmax.f32 %v2438_v32, 1e-16  ;;  %v5340_v32 = vadd.f32 %v5252_v54, %v5225_v21 }
 0x149   : > { %v2402_v38 = vpop.permute.xlu1 %2401  ;;  %v2397_v26 = vpop.permute.xlu0 %2396 }
 0x14a   : > { %v2425_v10 = vsub.f32 %v2402_v38, %v5236_v50  ;;  %v2424_v49 = vsub.f32 %v2397_v26, %v5236_v50  ;;  %v2471_v50 = vmax.f32 %v2439_v58, 1e-16  ;;  %v2542_v58 = vadd.s32 16, %v5228_v15 }
 0x14c   : > { %v2441_v41 = vand.u32 2147483647, %v2425_v10  ;;  %v2440_v62 = vand.u32 2147483647, %v2424_v49  ;;  %4153 = vrcp.f32 %v2471_v50  ;;  %v5325_v10 = vpop.eup %4139 }
 0x14d   : > { %4155 = vrcp.f32 %v2470_v43  ;;  %v5332_v49 = vpop.eup %4141  ;;  %v5347_v43 = vadd.s32 %v2576_v9, %v2575_v37 }
 0x14e   : > { %v2473_v56 = vmax.f32 %v2441_v41, 1e-16  ;;  %v2472_v47 = vmax.f32 %v2440_v62, 1e-16  ;;  %v5342_v40 = vpop.eup %4143  ;;  %v5345_v62 = vadd.s32 %v5322_v53, %v2541_v22 }
 0x14f   : > { %vm2578_vm15 = vcmp.eq.s32.totalorder %v5351_v45, %v5347_v43 }
 0x150   : > { %4157 = vrcp.f32 %v2473_v56  ;;  %v5353_v56 = vpop.eup %4145  ;;  %vm2579_vm14 = vcmp.eq.s32.totalorder %v5345_v62, %v5347_v43 }
 0x151   : > { %4159 = vrcp.f32 %v2472_v47  ;;  %v5360_v22 = vpop.eup %4147 }
 0x152   : > { %v5367_v9 = vpop.eup %4149 }
 0x1bf   : > { %v3623_v36 = vpop.f32.mrb[0].mxu1  ;;  %v3791_v38 = vpop.f32.mrb[0].mxu0 }
 0x1c0   : > { %v4005_v26 = vadd.f32 %v3791_v38, %v3623_v36  ;;  %v1341_v57 = vpop.f32.mrb[1].mxu1  ;;  %v1951_v12 = vpop.f32.mrb[1].mxu0  ;;  %v5357_v38 = vadd.s32 %v5322_v53, %v2543_v0  ;;  %v2546_v0 = vadd.s32 48, %v5228_v15 }
 0x1c1   : > { %v4006_v35 = vadd.f32 %v1951_v12, %v1341_v57  ;;  %v5364_v57 = vadd.s32 %v5322_v53, %v2542_v58  ;;  %v2545_v12 = vadd.s32 40, %v5228_v15  ;;  %v2548_v58 = vadd.s32 64, %v5228_v15 }
 0x1c2   : > { %v2165_v13 = vmul.f32 2.0, %v4005_v26 }
 0x1c3   : > { %v2164_v59 = vmul.f32 2.0, %v4006_v35  ;;  %v3626_v41 = vpop.f32.mrb[2].mxu1  ;;  %v3794_v50 = vpop.f32.mrb[2].mxu0  ;;  %v5391_v23 = vadd.s32 %v5322_v53, %v2545_v12 }
 0x1c4   : > { %v2181_v21 = vsub.f32 %v5270_v19, %v2165_v13  ;;  %v4007_v54 = vadd.f32 %v3794_v50, %v3626_v41  ;;  %v1355_v47 = vpop.f32.mrb[3].mxu1  ;;  %v1963_v36 = vpop.f32.mrb[3].mxu0  ;;  %v2547_v13 = vadd.s32 56, %v5228_v15 }
 0x1c5   : > { %v2180_v37 = vsub.f32 %v5262_v46, %v2164_v59  ;;  %v4008_v26 = vadd.f32 %v1963_v36, %v1355_v47  ;;  %v5373_v41 = vpop.eup %4151  ;;  %v2549_v36 = vadd.s32 72, %v5228_v15 }
 0x1c6   : > { %v5369_v19 = vmax.f32 %v2181_v21, 0.0  ;;  %v2167_v35 = vmul.f32 2.0, %v4007_v54  ;;  %v5379_v17 = vpop.eup %4153 }
 0x1c7   : > { %v5375_v50 = vmax.f32 %v2180_v37, 0.0  ;;  %v2166_v46 = vmul.f32 2.0, %v4008_v26  ;;  %v3629_v59 = vpop.f32.mrb[4].mxu1  ;;  %v3797_v47 = vpop.f32.mrb[4].mxu0 }
 0x1c8   : > { %4161 = vrsqrt.f32 %v5369_v19  ;;  %v2183_v21 = vsub.f32 %v5266_v27, %v2167_v35  ;;  %v4009_v54 = vadd.f32 %v3797_v47, %v3629_v59  ;;  %v1369_v51 = vpop.f32.mrb[5].mxu1  ;;  %v1975_v8 = vpop.f32.mrb[5].mxu0  ;;  %v5396_v27 = vadd.s32 %v5322_v53, %v2546_v0 }
 0x1c9   : > { %v5386_v37 = vpop.eup %4155  ;;  %4163 = vrsqrt.f32 %v5375_v50  ;;  %v2182_v26 = vsub.f32 %v5258_v39, %v2166_v46  ;;  %v4010_v20 = vadd.f32 %v1975_v8, %v1369_v51  ;;  %v5399_v35 = vadd.s32 %v5322_v53, %v2547_v13 }
 0x1ca   : > { %v5393_v3 = vmax.f32 %v2183_v21, 0.0  ;;  %v2169_v1 = vmul.f32 2.0, %v4009_v54  ;;  %v5401_v2 = vpop.eup %4157  ;;  %v5406_v8 = vadd.s32 %v5322_v53, %v2548_v58  ;;  %v5409_v51 = vadd.s32 %v5322_v53, %v2549_v36 }
 0x1cb   : > { %6242 = vst [vmem:[#allocation31_spill] sm:$0xff] %v5401_v2  ;;  %v5403_v59 = vmax.f32 %v2182_v26, 0.0  ;;  %v2168_v47 = vmul.f32 2.0, %v4010_v20  ;;  %v3632_v11 = vpop.f32.mrb[6].mxu1  ;;  %v3800_v39 = vpop.f32.mrb[6].mxu0  ;;  %v5415_v54 = vadd.s32 80, %v5228_v15 }
 0x1cc   : > { %v5411_v12 = vpop.eup %4159  ;;  %v2185_v0 = vsub.f32 %v5274_v14, %v2169_v1  ;;  %v4011_v46 = vadd.f32 %v3800_v39, %v3632_v11  ;;  %v1383_v13 = vpop.f32.mrb[7].mxu1  ;;  %v5418_v20 = vadd.s32 88, %v5228_v15  ;;  %4165 = vrsqrt.f32 %v5393_v3 }
 0x1cd   : > { %v1987_v21 = vpop.f32.mrb[7].mxu0  ;;  %v2184_v58 = vsub.f32 %v5280_v61, %v2168_v47  ;;  %vm2221_vm2 = vcmp.eq.f32.partialorder %v5369_v19, inf  ;;  %4167 = vrsqrt.f32 %v5403_v59  ;;  %vm2223_vm3 = vcmp.eq.f32.partialorder %v5369_v19, 0.0 }
 0x1ce   : > { %6243 = vst [vmem:[#allocation37_spill] sm:$0xff] %v5418_v20  ;;  %v4012_v26 = vadd.f32 %v1987_v21, %v1383_v13  ;;  %v5424_v36 = vmax.f32 %v2185_v0, 0.0  ;;  %v2171_v11 = vmul.f32 2.0, %v4011_v46  ;;  %v2224_v55 = vand.u32 2147483648, %v5369_v19 }
 0x1cf   : > { %v5427_v1 = vmax.f32 %v2184_v58, 0.0  ;;  %v3635_v39 = vpop.f32.mrb[8].mxu1  ;;  %v3803_v33 = vpop.f32.mrb[8].mxu0  ;;  %vm2214_vm4 = vcmp.eq.f32.partialorder %v5375_v50, inf  ;;  %vm2216_vm5 = vcmp.eq.f32.partialorder %v5375_v50, 0.0  ;;  %v2217_v0 = vand.u32 2147483648, %v5375_v50 }
 0x1d0   : > { %v2170_v14 = vmul.f32 2.0, %v4012_v26  ;;  %v2187_v61 = vsub.f32 %v5284_v18, %v2171_v11  ;;  %v4013_v47 = vadd.f32 %v3803_v33, %v3635_v39  ;;  %v1397_v13 = vpop.f32.mrb[9].mxu1  ;;  %v1999_v21 = vpop.f32.mrb[9].mxu0  ;;  %4169 = vrsqrt.f32 %v5424_v36 }
 0x1d1   : > { %v4014_v58 = vadd.f32 %v1999_v21, %v1397_v13  ;;  %v2238_v26 = vand.u32 2147483648, %v5393_v3  ;;  %4171 = vrsqrt.f32 %v5427_v1  ;;  %v2231_v33 = vand.u32 2147483648, %v5403_v59 }
 0x1d2   : > { %v2186_v46 = vsub.f32 %v5288_v5, %v2170_v14  ;;  %v4162_v48 = vpop.eup %4161  ;;  %v5438_v63 = vmax.f32 %v2187_v61, 0.0  ;;  %v2173_v18 = vmul.f32 2.0, %v4013_v47  ;;  %vm2235_vm6 = vcmp.eq.f32.partialorder %v5393_v3, inf }
 0x1d3   : > { %v4164_v11 = vpop.eup %4163  ;;  %v2172_v30 = vmul.f32 2.0, %v4014_v58  ;;  %v3638_v60 = vpop.f32.mrb[10].mxu1  ;;  %v2220_v20 = vmul.f32 %v4162_v48, %v5369_v19  ;;  %vm2237_vm7 = vcmp.eq.f32.partialorder %v5393_v3, 0.0  ;;  %vm2228_vm8 = vcmp.eq.f32.partialorder %v5403_v59, inf }
 0x1d4   : > { %v5441_v39 = vmax.f32 %v2186_v46, 0.0  ;;  %v3806_v2 = vpop.f32.mrb[10].mxu0  ;;  %4173 = vrsqrt.f32 %v5438_v63  ;;  %v2189_v14 = vsub.f32 %v5294_v52, %v2173_v18  ;;  %v1411_v61 = vpop.f32.mrb[11].mxu1  ;;  %v2213_v47 = vmul.f32 %v4164_v11, %v5375_v50 }
 0x1d5   : > { %v4015_v13 = vadd.f32 %v3806_v2, %v3638_v60  ;;  %v2011_v21 = vpop.f32.mrb[11].mxu0  ;;  %v2188_v46 = vsub.f32 %v5298_v16, %v2172_v30  ;;  %v2222_v48 = vsel %vm2221_vm2, %v5369_v19, %v2220_v20  ;;  %vm2230_vm9 = vcmp.eq.f32.partialorder %v5403_v59, 0.0 }
 0x1d6   : > { %4175 = vrsqrt.f32 %v5441_v39  ;;  %v4016_v58 = vadd.f32 %v2011_v21, %v1411_v61  ;;  %v5455_v5 = vmax.f32 %v2189_v14, 0.0  ;;  %v2225_v52 = vsel %vm2223_vm3, %v2224_v55, %v2222_v48  ;;  %v4166_v18 = vpop.eup %4165 }
 0x1d7   : > { %v2175_v60 = vmul.f32 2.0, %v4015_v13  ;;  %v2215_v2 = vsel %vm2214_vm4, %v5375_v50, %v2213_v47  ;;  %v5462_v11 = vmax.f32 %v2188_v46, 0.0  ;;  %v3641_v16 = vpop.f32.mrb[12].mxu1  ;;  %v3809_v61 = vpop.f32.mrb[12].mxu0  ;;  %v2443_v21 = vmul.f32 2.0, %v2225_v52 }
 0x1d8   : > { %v2174_v30 = vmul.f32 2.0, %v4016_v58  ;;  %v2218_v20 = vsel %vm2216_vm5, %v2217_v0, %v2215_v2  ;;  %v4168_v14 = vpop.eup %4167  ;;  %4177 = vrsqrt.f32 %v5455_v5  ;;  %v4017_v19 = vadd.f32 %v3809_v61, %v3641_v16  ;;  %v1425_v13 = vpop.f32.mrb[13].mxu1 }
 0x1d9   : > { %v2191_v55 = vsub.f32 %v5306_v7, %v2175_v60  ;;  %v2023_v47 = vpop.f32.mrb[13].mxu0  ;;  %v2442_v48 = vmul.f32 2.0, %v2218_v20  ;;  %4179 = vrsqrt.f32 %v5462_v11  ;;  %v2477_v50 = vmul.f32 %v5276_v34, %v2443_v21 }
 0x1da   : > { %v2190_v46 = vsub.f32 %v5310_v25, %v2174_v30  ;;  %v4018_v58 = vadd.f32 %v2023_v47, %v1425_v13  ;;  %vm2242_vm10 = vcmp.eq.f32.partialorder %v5427_v1, inf  ;;  %v2177_v52 = vmul.f32 2.0, %v4017_v19  ;;  %v4170_v2 = vpop.eup %4169 }
 0x1db   : > { %v5474_v0 = vmax.f32 %v2191_v55, 0.0  ;;  %v2475_v7 = vmul.f32 %v5290_v31, %v2442_v48  ;;  %v2234_v60 = vmul.f32 %v4166_v18, %v5393_v3  ;;  %vm2244_vm11 = vcmp.eq.f32.partialorder %v5427_v1, 0.0  ;;  %v3644_v20 = vpop.f32.mrb[14].mxu1  ;;  %v3812_v25 = vpop.f32.mrb[14].mxu0 }
 0x1dc   : > { %v5479_v16 = vmax.f32 %v2190_v46, 0.0  ;;  %v2176_v61 = vmul.f32 2.0, %v4018_v58  ;;  %v2508_v30 = vmul.f32 1.442695, %v2477_v50  ;;  %v2227_v34 = vmul.f32 %v4168_v14, %v5403_v59  ;;  %v4172_v21 = vpop.eup %4171  ;;  %v1439_v18 = vpop.f32.mrb[15].mxu1 }
 0x1dd   : > { %vm2249_vm12 = vcmp.eq.f32.partialorder %v5424_v36, inf  ;;  %4181 = vrsqrt.f32 %v5474_v0  ;;  %v2193_v31 = vsub.f32 %v5316_v4, %v2177_v52  ;;  %v4019_v55 = vadd.f32 %v3812_v25, %v3644_v20  ;;  %v2035_v19 = vpop.f32.mrb[15].mxu0 }
 0x1de   : > { %v2506_v13 = vmul.f32 1.442695, %v2475_v7  ;;  %vm2251_vm13 = vcmp.eq.f32.partialorder %v5424_v36, 0.0  ;;  %4183 = vrsqrt.f32 %v5479_v16  ;;  %v2192_v47 = vsub.f32 %v5329_v29, %v2176_v61  ;;  %v4174_v46 = vpop.eup %4173 }
 0x1df   : > { %v4020_v48 = vadd.f32 %v2035_v19, %v1439_v18  ;;  %v2236_v14 = vsel %vm2235_vm6, %v5393_v3, %v2234_v60  ;;  %v5491_v58 = vmax.f32 %v2193_v31, 0.0  ;;  %v2179_v50 = vmul.f32 2.0, %v4019_v55 }
 0x1e0   : > { %4185 = vpow2.f32 %v2508_v30  ;;  %v2239_v4 = vsel %vm2237_vm7, %v2238_v26, %v2236_v14  ;;  %v4176_v52 = vpop.eup %4175  ;;  %v5499_v29 = vmax.f32 %v2192_v47, 0.0  ;;  %v2229_v20 = vsel %vm2228_vm8, %v5403_v59, %v2227_v34 }
 0x1e1   : > { %v2178_v7 = vmul.f32 2.0, %v4020_v48  ;;  %4187 = vpow2.f32 %v2506_v13  ;;  %v2445_v60 = vmul.f32 2.0, %v2239_v4  ;;  %v2195_v61 = vsub.f32 %v5336_v24, %v2179_v50 }
 0x1e2   : > { %4189 = vrsqrt.f32 %v5491_v58  ;;  %v2241_v3 = vmul.f32 %v4172_v21, %v5427_v1  ;;  %v2232_v30 = vsel %vm2230_vm9, %v2231_v33, %v2229_v20  ;;  %v4178_v31 = vpop.eup %4177  ;;  %v2248_v21 = vmul.f32 %v4170_v2, %v5424_v36 }
 0x1e3   : > { %4191 = vrsqrt.f32 %v5499_v29  ;;  %v2194_v26 = vsub.f32 %v5340_v32, %v2178_v7  ;;  %v2481_v25 = vmul.f32 %v5302_v6, %v2445_v60  ;;  %v5516_v55 = vmax.f32 %v2195_v61, 0.0  ;;  %v4180_v18 = vpop.eup %4179 }
 0x1e4   : > { %v2444_v24 = vmul.f32 2.0, %v2232_v30  ;;  %v2243_v34 = vsel %vm2242_vm10, %v5427_v1, %v2241_v3  ;;  %v6244_v6 = vand.u32 2147483648, %v5427_v1  ;;  %v2252_v33 = vand.u32 2147483648, %v5424_v36 }
 0x1e5   : > { %v5522_v19 = vmax.f32 %v2194_v26, 0.0  ;;  %v2512_v32 = vmul.f32 1.442695, %v2481_v25  ;;  %4193 = vrsqrt.f32 %v5516_v55  ;;  %v2250_v2 = vsel %vm2249_vm12, %v5424_v36, %v2248_v21 }
 0x1e6   : > { %v2246_v59 = vsel %vm2244_vm11, %v6244_v6, %v2243_v34  ;;  %v2479_v13 = vmul.f32 %v5312_v28, %v2444_v24  ;;  %v2253_v48 = vsel %vm2251_vm13, %v2252_v33, %v2250_v2  ;;  %v2255_v14 = vmul.f32 %v4176_v52, %v5441_v39 }
 0x1e7   : > { %v2446_v47 = vmul.f32 2.0, %v2246_v59  ;;  %4195 = vrsqrt.f32 %v5522_v19  ;;  %vm2256_vm0 = vcmp.eq.f32.partialorder %v5441_v39, inf  ;;  %v5539_v1 = vpop.eup %4181  ;;  %vm2581_vm2 = vcmp.eq.s32.totalorder %v5357_v38, %v5347_v43 }
 0x1e8   : > { %4197 = vpow2.f32 %v2512_v32  ;;  %v2510_v28 = vmul.f32 1.442695, %v2479_v13  ;;  %v2447_v4 = vmul.f32 2.0, %v2253_v48  ;;  %v4184_v7 = vpop.eup %4183  ;;  %v2257_v60 = vsel %vm2256_vm0, %v5441_v39, %v2255_v14 }
 0x1e9   : > { %v2483_v50 = vmul.f32 %v5325_v10, %v2446_v47  ;;  %vm2258_vm3 = vcmp.eq.f32.partialorder %v5441_v39, 0.0  ;;  %v2259_v36 = vand.u32 2147483648, %v5441_v39  ;;  %v2262_v52 = vmul.f32 %v4174_v46, %v5438_v63 }
 0x1ea   : > { %v4186_v61 = vpop.eup %4185  ;;  %4199 = vpow2.f32 %v2510_v28  ;;  %v2485_v3 = vmul.f32 %v5320_v42, %v2447_v4  ;;  %vm2263_vm4 = vcmp.eq.f32.partialorder %v5438_v63, inf  ;;  %vm2580_vm5 = vcmp.eq.s32.totalorder %v5364_v57, %v5347_v43 }
 0x1eb   : > { %v2514_v20 = vmul.f32 1.442695, %v2483_v50  ;;  %v4188_v26 = vpop.eup %4187  ;;  %v2595_v10 = vsel %vm2579_vm14, 0.0, %v4186_v61  ;;  %v2260_v25 = vsel %vm2258_vm3, %v2259_v36, %v2257_v60  ;;  %v2264_v39 = vsel %vm2263_vm4, %v5438_v63, %v2262_v52 }
 0x1ec   : > { %vm2265_vm6 = vcmp.eq.f32.partialorder %v5438_v63, 0.0  ;;  %v5557_v46 = vpop.eup %4189  ;;  %2628 = vadd.xlane.f32.xlu1 %v2595_v10  ;;  %v2594_v42 = vsel %vm2578_vm15, 0.0, %v4188_v26  ;;  %vm2582_vm7 = vcmp.eq.s32.totalorder %v5384_v44, %v5347_v43  ;;  %v2516_v62 = vmul.f32 1.442695, %v2485_v3 }
 0x1ed   : > { %4201 = vpow2.f32 %v2514_v20  ;;  %v2448_v30 = vmul.f32 2.0, %v2260_v25  ;;  %v4192_v24 = vpop.eup %4191  ;;  %2626 = vadd.xlane.f32.xlu0 %v2594_v42  ;;  %v2266_v34 = vand.u32 2147483648, %v5438_v63  ;;  %v2269_v21 = vmul.f32 %v4180_v18, %v5462_v11 }
 0x1ee   : > { %vm2270_vm8 = vcmp.eq.f32.partialorder %v5462_v11, inf  ;;  %vm2272_vm9 = vcmp.eq.f32.partialorder %v5462_v11, 0.0  ;;  %4203 = vpow2.f32 %v2516_v62  ;;  %v2273_v32 = vand.u32 2147483648, %v5462_v11 }
 0x1ef   : > { %v2487_v45 = vmul.f32 %v5342_v40, %v2448_v30  ;;  %v2276_v6 = vmul.f32 %v4178_v31, %v5455_v5  ;;  %v2267_v59 = vsel %vm2265_vm6, %v2266_v34, %v2264_v39  ;;  %v2271_v33 = vsel %vm2270_vm8, %v5462_v11, %v2269_v21  ;;  %v5576_v18 = vpop.eup %4193 }
 0x1f0   : > { %vm2277_vm10 = vcmp.eq.f32.partialorder %v5455_v5, inf  ;;  %vm2279_vm11 = vcmp.eq.f32.partialorder %v5455_v5, 0.0  ;;  %vm2583_vm12 = vcmp.eq.s32.totalorder %v5391_v23, %v5347_v43  ;;  %v2449_v40 = vmul.f32 2.0, %v2267_v59 }
 0x1f1   : > { %v2518_v13 = vmul.f32 1.442695, %v2487_v45  ;;  %v2274_v47 = vsel %vm2272_vm9, %v2273_v32, %v2271_v33  ;;  %v2278_v2 = vsel %vm2277_vm10, %v5455_v5, %v2276_v6  ;;  %v5581_v31 = vpop.eup %4195  ;;  %v2280_v48 = vand.u32 2147483648, %v5455_v5 }
 0x1f2   : > { %v2450_v63 = vmul.f32 2.0, %v2274_v47  ;;  %v2283_v11 = vmul.f32 %v4184_v7, %v5479_v16  ;;  %vm2284_vm13 = vcmp.eq.f32.partialorder %v5479_v16, inf  ;;  %v4198_v14 = vpop.eup %4197  ;;  %vm2584_vm14 = vcmp.eq.s32.totalorder %v5396_v27, %v5347_v43 }
 0x1f3   : > { %4205 = vpow2.f32 %v2518_v13  ;;  %v2489_v28 = vmul.f32 %v5332_v49, %v2449_v40  ;;  %vm2286_vm15 = vcmp.eq.f32.partialorder %v5479_v16, 0.0  ;;  %v2287_v50 = vand.u32 2147483648, %v5479_v16 }
 0x1f4   : > { %v2597_v4 = vsel %vm2581_vm2, 0.0, %v4198_v14  ;;  %v2491_v60 = vmul.f32 %v5360_v22, %v2450_v63  ;;  %v2281_v7 = vsel %vm2279_vm11, %v2280_v48, %v2278_v2  ;;  %v2285_v36 = vsel %vm2284_vm13, %v5479_v16, %v2283_v11  ;;  %v4200_v52 = vpop.eup %4199 }
 0x1f5   : > { %2632 = vadd.xlane.f32.xlu0 %v2597_v4  ;;  %v2520_v61 = vmul.f32 1.442695, %v2489_v28  ;;  %v2451_v20 = vmul.f32 2.0, %v2281_v7  ;;  %v2288_v49 = vsel %vm2286_vm15, %v2287_v50, %v2285_v36  ;;  %v2290_v3 = vmul.f32 %v5539_v1, %v5474_v0 }
 0x1f6   : > { %v2522_v26 = vmul.f32 1.442695, %v2491_v60  ;;  %v2452_v10 = vmul.f32 2.0, %v2288_v49  ;;  %v5602_v38 = vadd.s32 %v5322_v53, %v5415_v54  ;;  %vm2291_vm0 = vcmp.eq.f32.partialorder %v5474_v0, inf  ;;  %v6245_v60 = vld [vmem:[#allocation37_spill] sm:$0xff] }
 0x1f7   : > { %v4202_v22 = vpop.eup %4201  ;;  %v2596_v5 = vsel %vm2580_vm5, 0.0, %v4200_v52  ;;  %4207 = vpow2.f32 %v2520_v61  ;;  %vm2585_vm2 = vcmp.eq.s32.totalorder %v5399_v35, %v5347_v43  ;;  %v2493_v16 = vmul.f32 %v5353_v56, %v2451_v20 }
 0x1f8   : > { %v2292_v1 = vsel %vm2291_vm0, %v5474_v0, %v2290_v3  ;;  %v2598_v54 = vsel %vm2582_vm7, 0.0, %v4202_v22  ;;  %4209 = vpow2.f32 %v2522_v26  ;;  %vm2586_vm3 = vcmp.eq.s32.totalorder %v5406_v8, %v5347_v43  ;;  %v4204_v39 = vpop.eup %4203  ;;  %v6246_v26 = vld [vmem:[#allocation31_spill] sm:$0xff] }
 0x1f9   : > { %v2495_v25 = vmul.f32 %v5373_v41, %v2452_v10  ;;  %v2294_v57 = vand.u32 2147483648, %v5474_v0  ;;  %2630 = vadd.xlane.f32.xlu0 %v2596_v5  ;;  %2634 = vadd.xlane.f32.xlu1 %v2598_v54  ;;  %v2524_v42 = vmul.f32 1.442695, %v2493_v16  ;;  %vm2293_vm4 = vcmp.eq.f32.partialorder %v5474_v0, 0.0 }
 0x1fa   : > { %v2297_v56 = vmul.f32 %v4192_v24, %v5499_v29  ;;  %vm2298_vm5 = vcmp.eq.f32.partialorder %v5499_v29, inf  ;;  %vm2300_vm6 = vcmp.eq.f32.partialorder %v5499_v29, 0.0  ;;  %v2301_v30 = vand.u32 2147483648, %v5499_v29 }
 0x1fb   : > { %v2526_v44 = vmul.f32 1.442695, %v2495_v25  ;;  %v2295_v62 = vsel %vm2293_vm4, %v2294_v57, %v2292_v1  ;;  %4211 = vpow2.f32 %v2524_v42  ;;  %vm2587_vm7 = vcmp.eq.s32.totalorder %v5409_v51, %v5347_v43 }
 0x1fc   : > { %v2453_v41 = vmul.f32 2.0, %v2295_v62  ;;  %v2299_v34 = vsel %vm2298_vm5, %v5499_v29, %v2297_v56  ;;  %v2304_v0 = vmul.f32 %v5557_v46, %v5491_v58  ;;  %v2599_v24 = vsel %vm2583_vm12, 0.0, %v4204_v39 }
 0x1fd   : > { %4213 = vpow2.f32 %v2526_v44  ;;  %v2302_v21 = vsel %vm2300_vm6, %v2301_v30, %v2299_v34  ;;  %vm2305_vm8 = vcmp.eq.f32.partialorder %v5491_v58, inf  ;;  %v4206_v45 = vpop.eup %4205  ;;  %2636 = vadd.xlane.f32.xlu0 %v2599_v24  ;;  %v2308_v29 = vand.u32 2147483648, %v5491_v58  ;;  %v2611_v30 = vld [vmem:[#allocation2 + $0x8] sm:$0xff] }
 0x1fe   : > { %v2497_v32 = vmul.f32 %v5367_v9, %v2453_v41  ;;  %v2454_v6 = vmul.f32 2.0, %v2302_v21  ;;  %v2306_v59 = vsel %vm2305_vm8, %v5491_v58, %v2304_v0  ;;  %v2600_v46 = vsel %vm2584_vm14, 0.0, %v4206_v45  ;;  %v2610_v41 = vld [vmem:[#allocation2] sm:$0xff] }
 0x1ff   : > { %vm2307_vm9 = vcmp.eq.f32.partialorder %v5491_v58, 0.0  ;;  %v2311_v23 = vmul.f32 %v5581_v31, %v5522_v19  ;;  %vm2312_vm10 = vcmp.eq.f32.partialorder %v5522_v19, inf  ;;  %2638 = vadd.xlane.f32.xlu1 %v2600_v46  ;;  %v2315_v40 = vand.u32 2147483648, %v5522_v19 }
 0x200   : > { %v2528_v33 = vmul.f32 1.442695, %v2497_v32  ;;  %v2499_v9 = vmul.f32 %v5386_v37, %v2454_v6  ;;  %v2309_v13 = vsel %vm2307_vm9, %v2308_v29, %v2306_v59  ;;  %vm2314_vm11 = vcmp.eq.f32.partialorder %v5522_v19, 0.0  ;;  %v2612_v6 = vld [vmem:[#allocation2 + $0x10] sm:$0xff]  ;;  %v2614_v59 = vld [vmem:[#allocation2 + $0x20] sm:$0xff] }
 0x201   : > { %v2455_v47 = vmul.f32 2.0, %v2309_v13  ;;  %v2313_v2 = vsel %vm2312_vm10, %v5522_v19, %v2311_v23  ;;  %v2318_v27 = vmul.f32 %v5576_v18, %v5516_v55  ;;  %v4208_v58 = vpop.eup %4207  ;;  %vm2319_vm12 = vcmp.eq.f32.partialorder %v5516_v55, inf  ;;  %v2616_v13 = vld [vmem:[#allocation2 + $0x30] sm:$0xff] }
 0x202   : > { %4215 = vpow2.f32 %v2528_v33  ;;  %v2530_v31 = vmul.f32 1.442695, %v2499_v9  ;;  %v2316_v63 = vsel %vm2314_vm11, %v2315_v40, %v2313_v2  ;;  %v4210_v48 = vpop.eup %4209  ;;  %v2601_v37 = vsel %vm2585_vm2, 0.0, %v4208_v58  ;;  %v2615_v33 = vld [vmem:[#allocation2 + $0x28] sm:$0xff]  ;;  %v2618_v58 = vld [vmem:[#allocation2 + $0x40] sm:$0xff] }
 0x203   : > { %v2501_v11 = vmul.f32 %v5379_v17, %v2455_v47  ;;  %v2456_v14 = vmul.f32 2.0, %v2316_v63  ;;  %v2320_v28 = vsel %vm2319_vm12, %v5516_v55, %v2318_v27  ;;  %2640 = vadd.xlane.f32.xlu0 %v2601_v37  ;;  %v2602_v19 = vsel %vm2586_vm3, 0.0, %v4210_v48  ;;  %v2617_v27 = vld [vmem:[#allocation2 + $0x38] sm:$0xff] }
 0x204   : > { %4217 = vpow2.f32 %v2530_v31  ;;  %v2552_v18 = vadd.s32 96, %v5228_v15  ;;  %v2322_v50 = vand.u32 2147483648, %v5516_v55  ;;  %2642 = vadd.xlane.f32.xlu1 %v2602_v19  ;;  %vm2588_vm13 = vcmp.eq.s32.totalorder %v5602_v38, %v5347_v43 }
 0x205   : > { %v2532_v35 = vmul.f32 1.442695, %v2501_v11  ;;  %v2503_v17 = vmul.f32 %v5411_v12, %v2456_v14  ;;  %vm2321_vm14 = vcmp.eq.f32.partialorder %v5516_v55, 0.0  ;;  %v4212_v4 = vpop.eup %4211  ;;  %v2568_v7 = vadd.s32 %v5322_v53, %v6245_v60  ;;  %v2619_v11 = vld [vmem:[#allocation2 + $0x48] sm:$0xff]  ;;  %v2620_v14 = vld [vmem:[#allocation2 + $0x50] sm:$0xff] }
 0x206   : > { %v2553_v8 = vadd.s32 104, %v5228_v15  ;;  %v2323_v36 = vsel %vm2321_vm14, %v2322_v50, %v2320_v28  ;;  %v2603_v61 = vsel %vm2587_vm7, 0.0, %v4212_v4  ;;  %v2569_v12 = vadd.s32 %v5322_v53, %v2552_v18  ;;  %v2622_v4 = vld [vmem:[#allocation2 + $0x60] sm:$0xff] }
 0x207   : > { %v4214_v52 = vpop.eup %4213  ;;  %4219 = vpow2.f32 %v2532_v35  ;;  %v2534_v20 = vmul.f32 1.442695, %v2503_v17  ;;  %v2457_v49 = vmul.f32 2.0, %v2323_v36  ;;  %2644 = vadd.xlane.f32.xlu0 %v2603_v61  ;;  %v2554_v55 = vadd.s32 112, %v5228_v15  ;;  %v2621_v35 = vld [vmem:[#allocation2 + $0x58] sm:$0xff]  ;;  %v2623_v36 = vld [vmem:[#allocation2 + $0x68] sm:$0xff] }
 0x208   : > { %v2604_v3 = vsel %vm2588_vm13, 0.0, %v4214_v52  ;;  %vm2589_vm15 = vcmp.eq.s32.totalorder %v2568_v7, %v5347_v43  ;;  %v2570_v38 = vadd.s32 %v5322_v53, %v2553_v8  ;;  %vm2590_vm0 = vcmp.eq.s32.totalorder %v2569_v12, %v5347_v43  ;;  %v2624_v61 = vld [vmem:[#allocation2 + $0x70] sm:$0xff]  ;;  %v2625_v12 = vld [vmem:[#allocation2 + $0x78] sm:$0xff] }
 0x209   : > { %2646 = vadd.xlane.f32.xlu1 %v2604_v3  ;;  %4221 = vpow2.f32 %v2534_v20  ;;  %v2505_v10 = vmul.f32 %v6246_v26, %v2457_v49  ;;  %v2571_v16 = vadd.s32 %v5322_v53, %v2554_v55  ;;  %v2555_v1 = vadd.s32 120, %v5228_v15 }
 0x20a   : > { %vm2591_vm2 = vcmp.eq.s32.totalorder %v2570_v38, %v5347_v43  ;;  %vm2674_vm5 = vcmask 7168   ;;  %v2694_v38 = vld [vmem:[%s4478_s11] sm:$0xff] (!%p3278_p11) }
 0x20b   : > { %v2536_v22 = vmul.f32 1.442695, %v2505_v10  ;;  %vm2592_vm3 = vcmp.eq.s32.totalorder %v2571_v16, %v5347_v43  ;;  %v2572_v39 = vadd.s32 %v5322_v53, %v2555_v1  ;;  %v2613_v53 = vld [vmem:[#allocation2 + $0x18] sm:$0xff]  ;;  %v2696_v10 = vld [vmem:[%s4478_s11 + $0x10] sm:$0xff] (!%p3278_p11)  ;;  %v6248_v16 = vld [vmem:[#allocation5_spill] sm:$0xff] (!%p3278_p11) }
 0x20c   : > { %v4216_v51 = vpop.eup %4215  ;;  %v2710_v1 = vsub.f32 (!%p3278_p11), %v6248_v16, %v2694_v38  ;;  %v2708_v38 = vld [vmem:[%s4478_s11 + $0x70] sm:$0xff] (!%p3278_p11) }
 0x20d   : > { %v2605_v5 = vsel %vm2589_vm15, 0.0, %v4216_v51  ;;  %4223 = vpow2.f32 %v2536_v22  ;;  %vm2593_vm4 = vcmp.eq.s32.totalorder %v2572_v39, %v5347_v43  ;;  %v2697_v22 = vld [vmem:[%s4478_s11 + $0x18] sm:$0xff] (!%p3278_p11)  ;;  %v2699_v39 = vld [vmem:[%s4478_s11 + $0x28] sm:$0xff] (!%p3278_p11) }
 0x20e   : > { %v4218_v54 = vpop.eup %4217  ;;  %2648 = vadd.xlane.f32.xlu0 %v2605_v5  ;;  %v6247_v51 = vld [vmem:[#allocation12_spill] sm:$0xff] (!%p3278_p11) }
 0x20f   : > { %v2606_v25 = vsel %vm2590_vm0, 0.0, %v4218_v54  ;;  %v2712_v5 = vsub.f32 (!%p3278_p11), %v6247_v51, %v2696_v10  ;;  %v6249_v54 = vld [vmem:[#allocation14_spill] sm:$0xff] (!%p3278_p11)  ;;  %v2709_v10 = vld [vmem:[%s4478_s11 + $0x78] sm:$0xff] (!%p3278_p11) }
 0x210   : > { %2650 = vadd.xlane.f32.xlu1 %v2606_v25  ;;  %v2713_v25 = vsub.f32 (!%p3278_p11), %v6249_v54, %v2697_v22  ;;  %v6261_v51 = vld [vmem:[#allocation44_spill] sm:$0xff] (!%p3278_p11) }
 0x211   : > { %v4220_v57 = vpop.eup %4219 }
 0x212   : > { %v2607_v42 = vsel %vm2591_vm2, 0.0, %v4220_v57  ;;  %v2695_v57 = vld [vmem:[%s4478_s11 + $0x8] sm:$0xff] (!%p3278_p11) }
 0x213   : > { %v4222_v56 = vpop.eup %4221  ;;  %2652 = vadd.xlane.f32.xlu0 %v2607_v42  ;;  %v2698_v42 = vld [vmem:[%s4478_s11 + $0x20] sm:$0xff] (!%p3278_p11) }
 0x214   : > { %v2608_v44 = vsel %vm2592_vm3, 0.0, %v4222_v56  ;;  %v6250_v56 = vld [vmem:[#allocation10_spill] sm:$0xff] (!%p3278_p11) }
 0x215   : > { %2654 = vadd.xlane.f32.xlu1 %v2608_v44  ;;  %v2711_v44 = vsub.f32 (!%p3278_p11), %v6250_v56, %v2695_v57 }
 0x217   : > { %v4224_v62 = vpop.eup %4223 }
 0x218   : > { %v2609_v15 = vsel %vm2593_vm4, 0.0, %v4224_v62  ;;  %v6251_v62 = vld [vmem:[#allocation16_spill] sm:$0xff] (!%p3278_p11) }
 0x219   : > { %2656 = vadd.xlane.f32.xlu0 %v2609_v15  ;;  %v2715_v15 = vsub.f32 (!%p3278_p11), %v6251_v62, %v2699_v39 }
 0x279   : > { %v2629_v34 = vpop.xlane.xlu1 %2628 }
 0x27a   : > { %v2659_v0 = vadd.f32 %v2629_v34, %v2611_v30  ;;  %v2627_v24 = vpop.xlane.xlu0 %2626  ;;  %v2728_v30 = vmul.f32 (!%p3278_p11), %v2712_v5, %v2712_v5  ;;  %v2729_v34 = vmul.f32 (!%p3278_p11), %v2713_v25, %v2713_v25  ;;  %v2725_v5 = vsub.f32 (!%p3278_p11), %v6261_v51, %v2709_v10  ;;  %v6262_v25 = vld [vmem:[#allocation43_spill] sm:$0xff] (!%p3278_p11) }
 0x27b   : > { %v2658_v21 = vadd.f32 %v2627_v24, %v2610_v41  ;;  %v2726_v41 = vmul.f32 (!%p3278_p11), %v2710_v1, %v2710_v1  ;;  %v2724_v57 = vsub.f32 (!%p3278_p11), %v6262_v25, %v2708_v38  ;;  %v6275_v38 = vld [vmem:[#allocation58_spill] sm:$0xff] (!%p3278_p11) }
 0x27c   : > { %2676 = vst.msk [vmem:[#allocation2 + $0x8] sm:$0xff] %vm2674_vm5, %v2659_v0  ;;  %v6252_v0 = vld [vmem:[#allocation15_spill] sm:$0xff] (!%p3278_p11)  ;;  %v2741_v56 = vmul.f32 (!%p3278_p11), %v2725_v5, %v2725_v5 }
 0x27d   : > { %2675 = vst.msk [vmem:[#allocation2] sm:$0xff] %vm2674_vm5, %v2658_v21  ;;  %v2714_v24 = vsub.f32 (!%p3278_p11), %v6252_v0, %v2698_v42  ;;  %v2701_v21 = vld [vmem:[%s4478_s11 + $0x38] sm:$0xff] (!%p3278_p11)  ;;  %v6263_v0 = vld [vmem:[#allocation39_spill] sm:$0xff] (!%p3278_p11) }
 0x27e   : > { %v2787_v62 = vsel (!%p3278_p11), %vm662_vm1, %v2741_v56, 0.0 }
 0x282   : > { %v2633_v45 = vpop.xlane.xlu0 %2632 }
 0x283   : > { %v2661_v32 = vadd.f32 %v2633_v45, %v2613_v53  ;;  %v2727_v53 = vmul.f32 (!%p3278_p11), %v2711_v44, %v2711_v44  ;;  %v2700_v45 = vld [vmem:[%s4478_s11 + $0x30] sm:$0xff] (!%p3278_p11)  ;;  %v2740_v44 = vmul.f32 (!%p3278_p11), %v2724_v57, %v2724_v57 }
 0x285   : > { %2678 = vst.msk [vmem:[#allocation2 + $0x18] sm:$0xff] %vm2674_vm5, %v2661_v32  ;;  %v2748_v32 = vsel (!%p3278_p11), %vm662_vm1, %v2728_v30, 0.0  ;;  %v2904_v30 = vld [vmem:[%s4483_s9 + $0x10] sm:$0xff] (!%p3278_p11) }
 0x286   : > { %v2631_v43 = vpop.xlane.xlu0 %2630  ;;  %v2635_v29 = vpop.xlane.xlu1 %2634  ;;  %2749 = vadd.xlane.f32.xlu1 (!%p3278_p11), %v2748_v32  ;;  %v2907_v32 = vld [vmem:[%s4483_s9 + $0x28] sm:$0xff] (!%p3278_p11) }
 0x287   : > { %v2660_v46 = vadd.f32 %v2631_v43, %v2612_v6  ;;  %v2662_v23 = vadd.f32 %v2635_v29, %v2614_v59  ;;  %v2742_v6 = vsel (!%p3278_p11), %vm662_vm1, %v2726_v41, 0.0  ;;  %v2731_v59 = vmul.f32 (!%p3278_p11), %v2715_v15, %v2715_v15  ;;  %v6253_v43 = vld [vmem:[#allocation21_spill] sm:$0xff] (!%p3278_p11) }
 0x288   : > { %2743 = vadd.xlane.f32.xlu0 (!%p3278_p11), %v2742_v6  ;;  %v2717_v29 = vsub.f32 (!%p3278_p11), %v6253_v43, %v2701_v21  ;;  %v2784_v15 = vsel (!%p3278_p11), %vm662_vm1, %v2740_v44, 0.0  ;;  %v2902_v41 = vld [vmem:[%s4483_s9] sm:$0xff] (!%p3278_p11)  ;;  %v2903_v21 = vld [vmem:[%s4483_s9 + $0x8] sm:$0xff] (!%p3278_p11)  ;;  %v6265_v6 = vld [vmem:[#allocation48_spill] sm:$0xff] (!%p3278_p11) }
 0x289   : > { %2677 = vst.msk [vmem:[#allocation2 + $0x10] sm:$0xff] %vm2674_vm5, %v2660_v46  ;;  %2679 = vst.msk [vmem:[#allocation2 + $0x20] sm:$0xff] %vm2674_vm5, %v2662_v23  ;;  %v2751_v46 = vsel (!%p3278_p11), %vm662_vm1, %v2729_v34, 0.0  ;;  %v2745_v23 = vsel (!%p3278_p11), %vm662_vm1, %v2727_v53, 0.0  ;;  %v2905_v34 = vld [vmem:[%s4483_s9 + $0x18] sm:$0xff] (!%p3278_p11)  ;;  %v2906_v43 = vld [vmem:[%s4483_s9 + $0x20] sm:$0xff] (!%p3278_p11) }
 0x28a   : > { %v2637_v9 = vpop.xlane.xlu0 %2636  ;;  %2752 = vadd.xlane.f32.xlu1 (!%p3278_p11), %v2751_v46  ;;  %v6264_v53 = vld [vmem:[#allocation40_spill] sm:$0xff] (!%p3278_p11) }
 0x28b   : > { %v2663_v40 = vadd.f32 %v2637_v9, %v2615_v33  ;;  %v2730_v33 = vmul.f32 (!%p3278_p11), %v2714_v24, %v2714_v24  ;;  %v6254_v9 = vld [vmem:[#allocation20_spill] sm:$0xff] (!%p3278_p11)  ;;  %v2920_v24 = vsub.f32 (!%p3278_p11), %v6263_v0, %v2904_v30 }
 0x28c   : > { %v2639_v47 = vpop.xlane.xlu1 %2638  ;;  %2746 = vadd.xlane.f32.xlu0 (!%p3278_p11), %v2745_v23  ;;  %v2909_v23 = vld [vmem:[%s4483_s9 + $0x38] sm:$0xff] (!%p3278_p11) }
 0x28d   : > { %2680 = vst.msk [vmem:[#allocation2 + $0x28] sm:$0xff] %vm2674_vm5, %v2663_v40  ;;  %v2664_v2 = vadd.f32 %v2639_v47, %v2616_v13  ;;  %v2716_v13 = vsub.f32 (!%p3278_p11), %v6254_v9, %v2700_v45  ;;  %v2703_v40 = vld [vmem:[%s4478_s11 + $0x48] sm:$0xff] (!%p3278_p11)  ;;  %v2702_v47 = vld [vmem:[%s4478_s11 + $0x40] sm:$0xff] (!%p3278_p11)  ;;  %v2918_v45 = vsub.f32 (!%p3278_p11), %v6264_v53, %v2902_v41  ;;  %v5806_v53 = vld [vmem:[%s4483_s9 + $0x78] sm:$0xff] (!%p3278_p11) }
 0x28e   : > { %v6267_v9 = vld [vmem:[#allocation50_spill] sm:$0xff] (!%p3278_p11) }
 0x28f   : > { %2681 = vst.msk [vmem:[#allocation2 + $0x30] sm:$0xff] %vm2674_vm5, %v2664_v2  ;;  %v2757_v2 = vsel (!%p3278_p11), %vm662_vm1, %v2731_v59, 0.0  ;;  %v2921_v59 = vsub.f32 (!%p3278_p11), %v6265_v6, %v2905_v34 }
 0x290   : > { %v2641_v31 = vpop.xlane.xlu0 %2640  ;;  %2758 = vadd.xlane.f32.xlu1 (!%p3278_p11), %v2757_v2  ;;  %v6268_v2 = vld [vmem:[#allocation51_spill] sm:$0xff] (!%p3278_p11) }
 0x291   : > { %v2665_v63 = vadd.f32 %v2641_v31, %v2617_v27  ;;  %v2643_v48 = vpop.xlane.xlu1 %2642  ;;  %v2733_v27 = vmul.f32 (!%p3278_p11), %v2717_v29, %v2717_v29  ;;  %v2732_v31 = vmul.f32 (!%p3278_p11), %v2716_v13, %v2716_v13  ;;  %v6266_v29 = vld [vmem:[#allocation49_spill] sm:$0xff] (!%p3278_p11)  ;;  %v2923_v13 = vsub.f32 (!%p3278_p11), %v6267_v9, %v2907_v32 }
 0x292   : > { %v2666_v37 = vadd.f32 %v2643_v48, %v2618_v58  ;;  %v2754_v58 = vsel (!%p3278_p11), %vm662_vm1, %v2730_v33, 0.0  ;;  %v2919_v46 = vsub.f32 (!%p3278_p11), %v6266_v29, %v2903_v21  ;;  %v2936_v33 = vand.u32 (!%p3278_p11), 2147483647, %v2920_v24 }
 0x293   : > { %2682 = vst.msk [vmem:[#allocation2 + $0x38] sm:$0xff] %vm2674_vm5, %v2665_v63  ;;  %v6255_v63 = vld [vmem:[#allocation29_spill] sm:$0xff] (!%p3278_p11)  ;;  %2755 = vadd.xlane.f32.xlu0 (!%p3278_p11), %v2754_v58  ;;  %v2911_v58 = vld [vmem:[%s4483_s9 + $0x48] sm:$0xff] (!%p3278_p11) }
 0x294   : > { %2683 = vst.msk [vmem:[#allocation2 + $0x40] sm:$0xff] %vm2674_vm5, %v2666_v37  ;;  %v2645_v28 = vpop.xlane.xlu0 %2644  ;;  %v2719_v48 = vsub.f32 (!%p3278_p11), %v6255_v63, %v2703_v40  ;;  %v6256_v37 = vld [vmem:[#allocation26_spill] sm:$0xff] (!%p3278_p11)  ;;  %v2908_v40 = vld [vmem:[%s4483_s9 + $0x30] sm:$0xff] (!%p3278_p11)  ;;  %v6269_v63 = vld [vmem:[#allocation52_spill] sm:$0xff] (!%p3278_p11)  ;;  %4225 = vrcp.f32 (!%p3278_p11), %v2936_v33 }
 0x295   : > { %v2667_v19 = vadd.f32 %v2645_v28, %v2619_v11  ;;  %v2718_v11 = vsub.f32 (!%p3278_p11), %v6256_v37, %v2702_v47  ;;  %v2704_v28 = vld [vmem:[%s4478_s11 + $0x50] sm:$0xff] (!%p3278_p11)  ;;  %v2934_v47 = vand.u32 (!%p3278_p11), 2147483647, %v2918_v45  ;;  %v2910_v37 = vld [vmem:[%s4483_s9 + $0x40] sm:$0xff] (!%p3278_p11) }
 0x296   : > { %v2647_v18 = vpop.xlane.xlu1 %2646  ;;  %v5809_v45 = vld [vmem:[%s4483_s9 + $0x70] sm:$0xff] (!%p3278_p11) }
 0x297   : > { %v2668_v50 = vadd.f32 %v2647_v18, %v2620_v14  ;;  %2684 = vst.msk [vmem:[#allocation2 + $0x48] sm:$0xff] %vm2674_vm5, %v2667_v19  ;;  %v2705_v14 = vld [vmem:[%s4478_s11 + $0x58] sm:$0xff] (!%p3278_p11)  ;;  %v2763_v19 = vsel (!%p3278_p11), %vm662_vm1, %v2733_v27, 0.0  ;;  %v6257_v18 = vld [vmem:[#allocation33_spill] sm:$0xff] (!%p3278_p11)  ;;  %v2922_v27 = vsub.f32 (!%p3278_p11), %v6268_v2, %v2906_v43  ;;  %4227 = vrcp.f32 (!%p3278_p11), %v2934_v47 }
 0x298   : > { %2764 = vadd.xlane.f32.xlu1 (!%p3278_p11), %v2763_v19  ;;  %v2939_v19 = vand.u32 (!%p3278_p11), 2147483647, %v2923_v13  ;;  %v6277_v43 = vld [vmem:[#allocation60_spill] sm:$0xff] (!%p3278_p11) }
 0x299   : > { %2685 = vst.msk [vmem:[#allocation2 + $0x50] sm:$0xff] %vm2674_vm5, %v2668_v50  ;;  %v2721_v50 = vsub.f32 (!%p3278_p11), %v6257_v18, %v2705_v14  ;;  %v6270_v14 = vld [vmem:[#allocation53_spill] sm:$0xff] (!%p3278_p11)  ;;  %v6271_v18 = vld [vmem:[#allocation54_spill] sm:$0xff] (!%p3278_p11)  ;;  %v2933_v29 = vsub.f32 (!%p3278_p11), %v6277_v43, %v5806_v53 }
 0x29b   : > { %v2649_v17 = vpop.xlane.xlu0 %2648 }
 0x29c   : > { %v2669_v60 = vadd.f32 %v2649_v17, %v2621_v35  ;;  %v2760_v35 = vsel (!%p3278_p11), %vm662_vm1, %v2732_v31, 0.0  ;;  %v2735_v17 = vmul.f32 (!%p3278_p11), %v2719_v48, %v2719_v48  ;;  %v2937_v31 = vand.u32 (!%p3278_p11), 2147483647, %v2921_v59 }
 0x29d   : > { %v2651_v7 = vpop.xlane.xlu1 %2650  ;;  %2761 = vadd.xlane.f32.xlu0 (!%p3278_p11), %v2760_v35  ;;  %v2925_v48 = vsub.f32 (!%p3278_p11), %v6269_v63, %v2909_v23  ;;  %v2938_v35 = vand.u32 (!%p3278_p11), 2147483647, %v2922_v27 }
 0x29e   : > { %2686 = vst.msk [vmem:[#allocation2 + $0x58] sm:$0xff] %vm2674_vm5, %v2669_v60  ;;  %v2670_v8 = vadd.f32 %v2651_v7, %v2622_v4  ;;  %v2734_v4 = vmul.f32 (!%p3278_p11), %v2718_v11, %v2718_v11  ;;  %v6258_v60 = vld [vmem:[#allocation32_spill] sm:$0xff] (!%p3278_p11)  ;;  %v2935_v11 = vand.u32 (!%p3278_p11), 2147483647, %v2919_v46  ;;  %4229 = vrcp.f32 (!%p3278_p11), %v2937_v31  ;;  %v5778_v25 = vpop.eup (!%p3278_p11), %4225  ;;  %v6278_v46 = vld [vmem:[#allocation61_spill] sm:$0xff] (!%p3278_p11) }
 0x29f   : > { %v2720_v7 = vsub.f32 (!%p3278_p11), %v6258_v60, %v2704_v28  ;;  %v2924_v28 = vsub.f32 (!%p3278_p11), %v6270_v14, %v2908_v40  ;;  %v2913_v60 = vld [vmem:[%s4483_s9 + $0x58] sm:$0xff] (!%p3278_p11)  ;;  %v2932_v23 = vsub.f32 (!%p3278_p11), %v6278_v46, %v5809_v45 }
 0x2a0   : > { %2687 = vst.msk [vmem:[#allocation2 + $0x60] sm:$0xff] %vm2674_vm5, %v2670_v8  ;;  %v2653_v52 = vpop.xlane.xlu0 %2652  ;;  %v2707_v8 = vld [vmem:[%s4478_s11 + $0x68] sm:$0xff] (!%p3278_p11)  ;;  %4231 = vrcp.f32 (!%p3278_p11), %v2935_v11 }
 0x2a1   : > { %v2671_v20 = vadd.f32 %v2653_v52, %v2623_v36  ;;  %v2706_v36 = vld [vmem:[%s4478_s11 + $0x60] sm:$0xff] (!%p3278_p11)  ;;  %v6259_v52 = vld [vmem:[#allocation38_spill] sm:$0xff] (!%p3278_p11)  ;;  %4233 = vrcp.f32 (!%p3278_p11), %v2939_v19  ;;  %v5780_v57 = vpop.eup (!%p3278_p11), %4227 }
 0x2a2   : > { %v2655_v49 = vpop.xlane.xlu1 %2654  ;;  %4235 = vrcp.f32 (!%p3278_p11), %v2938_v35 }
 0x2a3   : > { %2688 = vst.msk [vmem:[#allocation2 + $0x68] sm:$0xff] %vm2674_vm5, %v2671_v20  ;;  %v2672_v3 = vadd.f32 %v2655_v49, %v2624_v61  ;;  %2693 = sbr.rel (%p3278_p11) target bundleno = 854 (0x356), region = 52  ;;  %v2723_v61 = vsub.f32 (!%p3278_p11), %v6259_v52, %v2707_v8  ;;  %v6260_v20 = vld [vmem:[#allocation36_spill] sm:$0xff] (!%p3278_p11)  ;;  %v2912_v8 = vld [vmem:[%s4483_s9 + $0x50] sm:$0xff] (!%p3278_p11) }
 0x2a4   : > { %v2722_v49 = vsub.f32 (!%p3278_p11), %v6260_v20, %v2706_v36  ;;  %v2940_v36 = vand.u32 (!%p3278_p11), 2147483647, %v2924_v28 }
 0x2a5   : > { %2689 = vst.msk [vmem:[#allocation2 + $0x70] sm:$0xff] %vm2674_vm5, %v2672_v3  ;;  %v2769_v3 = vsel (!%p3278_p11), %vm662_vm1, %v2735_v17, 0.0  ;;  %v2739_v22 = vmul.f32 (!%p3278_p11), %v2723_v61, %v2723_v61  ;;  %v6272_v17 = vld [vmem:[#allocation55_spill] sm:$0xff] (!%p3278_p11)  ;;  %v6273_v61 = vld [vmem:[#allocation56_spill] sm:$0xff] (!%p3278_p11) }
 0x2a6   : > { %v2657_v55 = vpop.xlane.xlu0 %2656  ;;  %2770 = vadd.xlane.f32.xlu1 (!%p3278_p11), %v2769_v3  ;;  %v2738_v54 = vmul.f32 (!%p3278_p11), %v2722_v49, %v2722_v49  ;;  %v2929_v20 = vsub.f32 (!%p3278_p11), %v6273_v61, %v2913_v60  ;;  %v6274_v3 = vld [vmem:[#allocation57_spill] sm:$0xff] (!%p3278_p11) }
 0x2a7   : > { %v2673_v26 = vadd.f32 %v2657_v55, %v2625_v12  ;;  %v2766_v12 = vsel (!%p3278_p11), %vm662_vm1, %v2734_v4, 0.0  ;;  %v2737_v55 = vmul.f32 (!%p3278_p11), %v2721_v50, %v2721_v50  ;;  %v2781_v39 = vsel (!%p3278_p11), %vm662_vm1, %v2739_v22, 0.0 }
 0x2a8   : > { %2767 = vadd.xlane.f32.xlu0 (!%p3278_p11), %v2766_v12  ;;  %v2778_v42 = vsel (!%p3278_p11), %vm662_vm1, %v2738_v54, 0.0  ;;  %v2927_v50 = vsub.f32 (!%p3278_p11), %v6271_v18, %v2911_v58  ;;  %v2926_v4 = vsub.f32 (!%p3278_p11), %v6272_v17, %v2910_v37  ;;  %v2928_v12 = vsub.f32 (!%p3278_p11), %v6274_v3, %v2912_v8 }
 0x2a9   : > { %2690 = vst.msk [vmem:[#allocation2 + $0x78] sm:$0xff] %vm2674_vm5, %v2673_v26  ;;  %v2736_v26 = vmul.f32 (!%p3278_p11), %v2720_v7, %v2720_v7  ;;  %v2775_v16 = vsel (!%p3278_p11), %vm662_vm1, %v2737_v55, 0.0  ;;  %v2941_v7 = vand.u32 (!%p3278_p11), 2147483647, %v2925_v48  ;;  %v2915_v55 = vld [vmem:[%s4483_s9 + $0x68] sm:$0xff] (!%p3278_p11) }
 0x2aa   : > { %2776 = vadd.xlane.f32.xlu1 %v2775_v16  ;;  %v2943_v52 = vand.u32 2147483647, %v2927_v50  ;;  %v2942_v49 = vand.u32 2147483647, %v2926_v4  ;;  %v2945_v10 = vand.u32 2147483647, %v2929_v20  ;;  %v2931_v22 = vsub.f32 %v6275_v38, %v2915_v55 }
 0x2ab   : > { %v2772_v1 = vsel %vm662_vm1, %v2736_v26, 0.0  ;;  %4237 = vrcp.f32 %v2941_v7  ;;  %v2914_v26 = vld [vmem:[%s4483_s9 + $0x60] sm:$0xff]  ;;  %v2944_v16 = vand.u32 2147483647, %v2928_v12 }
 0x2ac   : > { %2773 = vadd.xlane.f32.xlu0 %v2772_v1  ;;  %4239 = vrcp.f32 %v2940_v36  ;;  %v6276_v1 = vld [vmem:[#allocation59_spill] sm:$0xff] }
 0x2ad   : > { %4241 = vrcp.f32 %v2943_v52  ;;  %v2930_v54 = vsub.f32 %v6276_v1, %v2914_v26 }
 0x2ae   : > { %2782 = vadd.xlane.f32.xlu1 %v2781_v39  ;;  %4243 = vrcp.f32 %v2942_v49  ;;  %v5783_v39 = vpop.eup %4229 }
 0x2af   : > { %v5785_v56 = vpop.eup %4231 }
 0x2b0   : > { %2779 = vadd.xlane.f32.xlu0 %v2778_v42  ;;  %v2947_v42 = vand.u32 2147483647, %v2931_v22  ;;  %v5791_v30 = vpop.eup %4233 }
 0x2b1   : > { %v5794_v41 = vpop.eup %4235 }
 0x2b2   : > { %2788 = vadd.xlane.f32.xlu1 %v2787_v62 }
 0x2b4   : > { %2785 = vadd.xlane.f32.xlu0 %v2784_v15  ;;  %v2946_v15 = vand.u32 2147483647, %v2930_v54 }
 0x2b5   : > { %v5797_v34 = vpop.eup %4237 }
 0x2b6   : > { %v5799_v0 = vpop.eup %4239 }
 0x2b7   : > { %v5811_v32 = vpop.eup %4241 }
 0x2b8   : > { %v5814_v6 = vpop.eup %4243 }
 0x313   : > { %v2750_v51 = vpop.xlane.xlu1 %2749 }
 0x314   : > { %4245 = vrsqrt.f32 %v2750_v51  ;;  %vm2806_vm1 = vcmp.eq.f32.partialorder %v2750_v51, inf  ;;  %vm2808_vm6 = vcmp.eq.f32.partialorder %v2750_v51, 0.0  ;;  %v2809_v13 = vand.u32 2147483648, %v2750_v51 }
 0x315   : > { %v5775_v5 = vpop.xlane.xlu0 %2743 }
 0x316   : > { %4247 = vrsqrt.f32 %v5775_v5  ;;  %vm2792_vm7 = vcmp.eq.f32.partialorder %v5775_v5, inf  ;;  %vm2794_vm8 = vcmp.eq.f32.partialorder %v5775_v5, 0.0  ;;  %v2795_v58 = vand.u32 2147483648, %v5775_v5 }
 0x317   : > { %4249 = vrcp.f32 %v2945_v10  ;;  %v5787_v44 = vpop.xlane.xlu1 %2752 }
 0x318   : > { %4251 = vrcp.f32 %v2944_v16  ;;  %vm2813_vm9 = vcmp.eq.f32.partialorder %v5787_v44, inf  ;;  %vm2815_vm10 = vcmp.eq.f32.partialorder %v5787_v44, 0.0  ;;  %v2816_v48 = vand.u32 2147483648, %v5787_v44 }
 0x319   : > { %v5789_v62 = vpop.xlane.xlu0 %2746  ;;  %4253 = vrsqrt.f32 %v5787_v44 }
 0x31a   : > { %4255 = vrsqrt.f32 %v5789_v62  ;;  %vm2799_vm11 = vcmp.eq.f32.partialorder %v5789_v62, inf  ;;  %vm2801_vm12 = vcmp.eq.f32.partialorder %v5789_v62, 0.0  ;;  %v2802_v35 = vand.u32 2147483648, %v5789_v62 }
 0x31b   : > { %4257 = vrcp.f32 %v2947_v42 }
 0x31c   : > { %4259 = vrcp.f32 %v2946_v15 }
 0x31d   : > { %v5801_v24 = vpop.xlane.xlu1 %2758 }
 0x31e   : > { %4261 = vrsqrt.f32 %v5801_v24  ;;  %v4246_v59 = vpop.eup %4245  ;;  %vm2827_vm13 = vcmp.eq.f32.partialorder %v5801_v24, inf  ;;  %vm2829_vm14 = vcmp.eq.f32.partialorder %v5801_v24, 0.0  ;;  %v2830_v20 = vand.u32 2147483648, %v5801_v24 }
 0x31f   : > { %v2805_v9 = vmul.f32 %v4246_v59, %v2750_v51 }
 0x320   : > { %v5803_v21 = vpop.xlane.xlu0 %2755  ;;  %v4248_v33 = vpop.eup %4247 }
 0x321   : > { %4263 = vrsqrt.f32 %v5803_v21  ;;  %v5827_v2 = vpop.eup %4249  ;;  %v2791_v27 = vmul.f32 %v4248_v33, %v5775_v5  ;;  %v2807_v63 = vsel %vm2806_vm1, %v2750_v51, %v2805_v9  ;;  %vm2820_vm15 = vcmp.eq.f32.partialorder %v5803_v21, inf }
 0x322   : > { %v5833_v31 = vpop.eup %4251  ;;  %v2810_v11 = vsel %vm2808_vm6, %v2809_v13, %v2807_v63  ;;  %vm2822_vm0 = vcmp.eq.f32.partialorder %v5803_v21, 0.0  ;;  %v2823_v54 = vand.u32 2147483648, %v5803_v21 }
 0x323   : > { %v4254_v37 = vpop.eup %4253  ;;  %v2793_v14 = vsel %vm2792_vm7, %v5775_v5, %v2791_v27  ;;  %v2952_v19 = vmul.f32 2.0, %v2810_v11 }
 0x324   : > { %v4256_v28 = vpop.eup %4255  ;;  %v2796_v18 = vsel %vm2794_vm8, %v2795_v58, %v2793_v14  ;;  %v2812_v50 = vmul.f32 %v4254_v37, %v5787_v44 }
 0x325   : > { %v5823_v40 = vpop.xlane.xlu1 %2764  ;;  %v5853_v60 = vpop.eup %4257  ;;  %v2950_v7 = vmul.f32 2.0, %v2796_v18  ;;  %v2798_v8 = vmul.f32 %v4256_v28, %v5789_v62  ;;  %v2971_v52 = vmul.f32 %v5778_v25, %v2952_v19 }
 0x326   : > { %4265 = vrsqrt.f32 %v5823_v40  ;;  %v5858_v36 = vpop.eup %4259  ;;  %v2814_v61 = vsel %vm2813_vm9, %v5787_v44, %v2812_v50  ;;  %vm2841_vm2 = vcmp.eq.f32.partialorder %v5823_v40, inf  ;;  %vm2843_vm3 = vcmp.eq.f32.partialorder %v5823_v40, 0.0 }
 0x327   : > { %v2967_v3 = vmul.f32 %v5780_v57, %v2950_v7  ;;  %v2817_v12 = vsel %vm2815_vm10, %v2816_v48, %v2814_v61  ;;  %v2800_v55 = vsel %vm2799_vm11, %v5789_v62, %v2798_v8  ;;  %3000 = vst.msk [vmem:[%s4464_s16 + $0x10] sm:$0xff] %vm2674_vm5, %v2971_v52  ;;  %v2844_v13 = vand.u32 2147483648, %v5823_v40 }
 0x328   : > { %v4262_v49 = vpop.eup %4261  ;;  %v2953_v10 = vmul.f32 2.0, %v2817_v12  ;;  %v2803_v38 = vsel %vm2801_vm12, %v2802_v35, %v2800_v55  ;;  %v2949_v50 = vand.u32 2147483647, %v2933_v29 }
 0x329   : > { %v2826_v22 = vmul.f32 %v4262_v49, %v5801_v24  ;;  %2998 = vst.msk [vmem:[%s4464_s16] sm:$0xff] %vm2674_vm5, %v2967_v3  ;;  %v2951_v16 = vmul.f32 2.0, %v2803_v38  ;;  %v2948_v3 = vand.u32 2147483647, %v2932_v23 }
 0x32a   : > { %v5825_v47 = vpop.xlane.xlu0 %2761  ;;  %v2973_v25 = vmul.f32 %v5783_v39, %v2953_v10 }
 0x32b   : > { %4267 = vrsqrt.f32 %v5825_v47  ;;  %v4264_v26 = vpop.eup %4263  ;;  %v2828_v57 = vsel %vm2827_vm13, %v5801_v24, %v2826_v22  ;;  %v2969_v44 = vmul.f32 %v5785_v56, %v2951_v16  ;;  %vm2834_vm4 = vcmp.eq.f32.partialorder %v5825_v47, inf }
 0x32c   : > { %v2819_v1 = vmul.f32 %v4264_v26, %v5803_v21  ;;  %v2831_v62 = vsel %vm2829_vm14, %v2830_v20, %v2828_v57  ;;  %3001 = vst.msk [vmem:[%s4464_s16 + $0x18] sm:$0xff] %vm2674_vm5, %v2973_v25  ;;  %vm2836_vm1 = vcmp.eq.f32.partialorder %v5825_v47, 0.0  ;;  %v2837_v48 = vand.u32 2147483648, %v5825_v47 }
 0x32d   : > { %v2955_v59 = vmul.f32 2.0, %v2831_v62  ;;  %2999 = vst.msk [vmem:[%s4464_s16 + $0x8] sm:$0xff] %vm2674_vm5, %v2969_v44 }
 0x32e   : > { %v2821_v15 = vsel %vm2820_vm15, %v5803_v21, %v2819_v1 }
 0x32f   : > { %v2824_v33 = vsel %vm2822_vm0, %v2823_v54, %v2821_v15  ;;  %v2977_v58 = vmul.f32 %v5791_v30, %v2955_v59 }
 0x330   : > { %v4266_v42 = vpop.eup %4265  ;;  %v2954_v56 = vmul.f32 2.0, %v2824_v33 }
 0x331   : > { %v2840_v9 = vmul.f32 %v4266_v42, %v5823_v40  ;;  %3003 = vst.msk [vmem:[%s4464_s16 + $0x28] sm:$0xff] %vm2674_vm5, %v2977_v58 }
 0x332   : > { %v2975_v11 = vmul.f32 %v5794_v41, %v2954_v56 }
 0x333   : > { %v5849_v17 = vpop.xlane.xlu1 %2770  ;;  %v2842_v63 = vsel %vm2841_vm2, %v5823_v40, %v2840_v9 }
 0x334   : > { %4269 = vrsqrt.f32 %v5849_v17  ;;  %v2845_v14 = vsel %vm2843_vm3, %v2844_v13, %v2842_v63  ;;  %3002 = vst.msk [vmem:[%s4464_s16 + $0x20] sm:$0xff] %vm2674_vm5, %v2975_v11  ;;  %vm2855_vm6 = vcmp.eq.f32.partialorder %v5849_v17, inf  ;;  %v2858_v40 = vand.u32 2147483648, %v5849_v17 }
 0x335   : > { %v5851_v4 = vpop.xlane.xlu0 %2767  ;;  %v4268_v39 = vpop.eup %4267  ;;  %v2957_v30 = vmul.f32 2.0, %v2845_v14  ;;  %vm2857_vm7 = vcmp.eq.f32.partialorder %v5849_v17, 0.0 }
 0x336   : > { %4271 = vrsqrt.f32 %v5851_v4  ;;  %v2833_v24 = vmul.f32 %v4268_v39, %v5825_v47  ;;  %vm2848_vm8 = vcmp.eq.f32.partialorder %v5851_v4, inf  ;;  %v2851_v52 = vand.u32 2147483648, %v5851_v4 }
 0x337   : > { %v5879_v51 = vpop.xlane.xlu1 %2776  ;;  %v2981_v7 = vmul.f32 %v5797_v34, %v2957_v30  ;;  %vm2850_vm9 = vcmp.eq.f32.partialorder %v5851_v4, 0.0 }
 0x338   : > { %4273 = vrsqrt.f32 %v5879_v51  ;;  %v2835_v28 = vsel %vm2834_vm4, %v5825_v47, %v2833_v24  ;;  %vm2869_vm10 = vcmp.eq.f32.partialorder %v5879_v51, inf  ;;  %v2872_v26 = vand.u32 2147483648, %v5879_v51 }
 0x339   : > { %v5881_v5 = vpop.xlane.xlu0 %2773  ;;  %v2838_v19 = vsel %vm2836_vm1, %v2837_v48, %v2835_v28  ;;  %3005 = vst.msk [vmem:[%s4464_s16 + $0x38] sm:$0xff] %vm2674_vm5, %v2981_v7  ;;  %vm2871_vm11 = vcmp.eq.f32.partialorder %v5879_v51, 0.0 }
 0x33a   : > { %4275 = vrsqrt.f32 %v5881_v5  ;;  %v2956_v41 = vmul.f32 2.0, %v2838_v19  ;;  %vm2862_vm12 = vcmp.eq.f32.partialorder %v5881_v5, inf  ;;  %v2865_v23 = vand.u32 2147483648, %v5881_v5 }
 0x33b   : > { %v5903_v27 = vpop.xlane.xlu1 %2782  ;;  %vm2864_vm13 = vcmp.eq.f32.partialorder %v5881_v5, 0.0 }
 0x33c   : > { %4277 = vrsqrt.f32 %v5903_v27  ;;  %v2979_v43 = vmul.f32 %v5799_v0, %v2956_v41  ;;  %vm2883_vm14 = vcmp.eq.f32.partialorder %v5903_v27, inf  ;;  %v2886_v25 = vand.u32 2147483648, %v5903_v27 }
 0x33d   : > { %v5910_v21 = vpop.xlane.xlu0 %2779  ;;  %vm2885_vm15 = vcmp.eq.f32.partialorder %v5903_v27, 0.0 }
 0x33e   : > { %v4270_v37 = vpop.eup %4269  ;;  %4279 = vrsqrt.f32 %v5910_v21  ;;  %3004 = vst.msk [vmem:[%s4464_s16 + $0x30] sm:$0xff] %vm2674_vm5, %v2979_v43  ;;  %vm2876_vm0 = vcmp.eq.f32.partialorder %v5910_v21, inf  ;;  %vm2878_vm2 = vcmp.eq.f32.partialorder %v5910_v21, 0.0 }
 0x33f   : > { %v2854_v18 = vmul.f32 %v4270_v37, %v5849_v17  ;;  %v5934_v47 = vpop.xlane.xlu1 %2788 }
 0x340   : > { %v4272_v35 = vpop.eup %4271  ;;  %4281 = vrsqrt.f32 %v5934_v47  ;;  %vm2897_vm3 = vcmp.eq.f32.partialorder %v5934_v47, inf  ;;  %vm2899_vm4 = vcmp.eq.f32.partialorder %v5934_v47, 0.0 }
 0x341   : > { %v2856_v8 = vsel %vm2855_vm6, %v5849_v17, %v2854_v18  ;;  %v2847_v53 = vmul.f32 %v4272_v35, %v5851_v4  ;;  %v5943_v61 = vpop.xlane.xlu0 %2785 }
 0x342   : > { %v2859_v29 = vsel %vm2857_vm7, %v2858_v40, %v2856_v8  ;;  %v4274_v20 = vpop.eup %4273  ;;  %4283 = vrsqrt.f32 %v5943_v61  ;;  %vm2890_vm1 = vcmp.eq.f32.partialorder %v5943_v61, inf  ;;  %v2893_v48 = vand.u32 2147483648, %v5943_v61 }
 0x343   : > { %v2959_v49 = vmul.f32 2.0, %v2859_v29  ;;  %v2849_v34 = vsel %vm2848_vm8, %v5851_v4, %v2847_v53  ;;  %v2868_v17 = vmul.f32 %v4274_v20, %v5879_v51  ;;  %4285 = vrcp.f32 %v2949_v50 }
 0x344   : > { %v2852_v0 = vsel %vm2850_vm9, %v2851_v52, %v2849_v34  ;;  %v4276_v4 = vpop.eup %4275  ;;  %4287 = vrcp.f32 %v2948_v3  ;;  %vm2892_vm6 = vcmp.eq.f32.partialorder %v5943_v61, 0.0 }
 0x345   : > { %v2985_v12 = vmul.f32 %v5811_v32, %v2959_v49  ;;  %v2958_v55 = vmul.f32 2.0, %v2852_v0  ;;  %v2870_v10 = vsel %vm2869_vm10, %v5879_v51, %v2868_v17  ;;  %v2861_v45 = vmul.f32 %v4276_v4, %v5881_v5 }
 0x346   : > { %v2873_v22 = vsel %vm2871_vm11, %v2872_v26, %v2870_v10  ;;  %v4278_v32 = vpop.eup %4277 }
 0x347   : > { %3007 = vst.msk [vmem:[%s4464_s16 + $0x48] sm:$0xff] %vm2674_vm5, %v2985_v12  ;;  %v2983_v38 = vmul.f32 %v5814_v6, %v2958_v55  ;;  %v2961_v46 = vmul.f32 2.0, %v2873_v22  ;;  %v2863_v16 = vsel %vm2862_vm12, %v5881_v5, %v2861_v45  ;;  %v2882_v51 = vmul.f32 %v4278_v32, %v5903_v27 }
 0x348   : > { %v4280_v6 = vpop.eup %4279  ;;  %v2866_v54 = vsel %vm2864_vm13, %v2865_v23, %v2863_v16 }
 0x349   : > { %3006 = vst.msk [vmem:[%s4464_s16 + $0x40] sm:$0xff] %vm2674_vm5, %v2983_v38  ;;  %v2989_v1 = vmul.f32 %v5827_v2, %v2961_v46  ;;  %v2960_v57 = vmul.f32 2.0, %v2866_v54  ;;  %v2884_v42 = vsel %vm2883_vm14, %v5903_v27, %v2882_v51  ;;  %v2875_v44 = vmul.f32 %v4280_v6, %v5910_v21 }
 0x34a   : > { %v2887_v5 = vsel %vm2885_vm15, %v2886_v25, %v2884_v42  ;;  %v2879_v2 = vand.u32 2147483648, %v5910_v21  ;;  %v4282_v62 = vpop.eup %4281 }
 0x34b   : > { %3009 = vst.msk [vmem:[%s4464_s16 + $0x58] sm:$0xff] %vm2674_vm5, %v2989_v1  ;;  %v2987_v15 = vmul.f32 %v5833_v31, %v2960_v57  ;;  %v2963_v39 = vmul.f32 2.0, %v2887_v5  ;;  %v2877_v59 = vsel %vm2876_vm0, %v5910_v21, %v2875_v44  ;;  %v2896_v9 = vmul.f32 %v4282_v62, %v5934_v47 }
 0x34c   : > { %v2880_v33 = vsel %vm2878_vm2, %v2879_v2, %v2877_v59  ;;  %v4284_v13 = vpop.eup %4283  ;;  %v2900_v31 = vand.u32 2147483648, %v5934_v47 }
 0x34d   : > { %3008 = vst.msk [vmem:[%s4464_s16 + $0x50] sm:$0xff] %vm2674_vm5, %v2987_v15  ;;  %v2993_v27 = vmul.f32 %v5853_v60, %v2963_v39  ;;  %v2962_v56 = vmul.f32 2.0, %v2880_v33  ;;  %v2898_v24 = vsel %vm2897_vm3, %v5934_v47, %v2896_v9  ;;  %v2889_v21 = vmul.f32 %v4284_v13, %v5943_v61  ;;  %v4286_v58 = vpop.eup %4285 }
 0x34e   : > { %v2901_v60 = vsel %vm2899_vm4, %v2900_v31, %v2898_v24  ;;  %v4288_v14 = vpop.eup %4287 }
 0x34f   : > { %3011 = vst.msk [vmem:[%s4464_s16 + $0x68] sm:$0xff] %vm2674_vm5, %v2993_v27  ;;  %v2991_v63 = vmul.f32 %v5858_v36, %v2962_v56  ;;  %v2965_v37 = vmul.f32 2.0, %v2901_v60  ;;  %v2891_v11 = vsel %vm2890_vm1, %v5943_v61, %v2889_v21 }
 0x350   : > { %v2894_v28 = vsel %vm2892_vm6, %v2893_v48, %v2891_v11 }
 0x351   : > { %3010 = vst.msk [vmem:[%s4464_s16 + $0x60] sm:$0xff] %vm2674_vm5, %v2991_v63  ;;  %v2997_v30 = vmul.f32 %v4286_v58, %v2965_v37  ;;  %v2964_v19 = vmul.f32 2.0, %v2894_v28 }
 0x353   : > { %3013 = vst.msk [vmem:[%s4464_s16 + $0x78] sm:$0xff] %vm2674_vm5, %v2997_v30  ;;  %v2995_v18 = vmul.f32 %v4288_v14, %v2964_v19 }
 0x355   : > { %3012 = vst.msk [vmem:[%s4464_s16 + $0x70] sm:$0xff] %vm2674_vm5, %v2995_v18 }
 0x356 PF: > { %p3282_p12 = scmp.ne.s32.totalorder %s4343_s24, 1 }
 0x357   : > { %v3018_v36 = vld [vmem:[#allocation2] sm:$0xff] (!%p3282_p12)  ;;  %v3019_v50 = vld [vmem:[#allocation2 + $0x8] sm:$0xff] (!%p3282_p12)  ;;  %v3020_v35 = vld [vmem:[#allocation2 + $0x10] sm:$0xff] (!%p3282_p12) }
 0x358   : > { %3017 = sbr.rel (%p3282_p12) target bundleno = 885 (0x375), region = 56  ;;  %4289 = vlog2.f32 (!%p3282_p12), %v3018_v36  ;;  %v3021_v41 = vld [vmem:[#allocation2 + $0x18] sm:$0xff] (!%p3282_p12)  ;;  %v3022_v40 = vld [vmem:[#allocation2 + $0x20] sm:$0xff] (!%p3282_p12)  ;;  %v3023_v47 = vld [vmem:[#allocation2 + $0x28] sm:$0xff] (!%p3282_p12) }
 0x359   : > { %4291 = vlog2.f32 (!%p3282_p12), %v3019_v50  ;;  %v3024_v7 = vld [vmem:[#allocation2 + $0x30] sm:$0xff] (!%p3282_p12)  ;;  %v3025_v8 = vld [vmem:[#allocation2 + $0x38] sm:$0xff] (!%p3282_p12)  ;;  %v3026_v53 = vld [vmem:[#allocation2 + $0x40] sm:$0xff] (!%p3282_p12) }
 0x35a   : > { %4293 = vlog2.f32 (!%p3282_p12), %v3020_v35  ;;  %v3027_v43 = vld [vmem:[#allocation2 + $0x48] sm:$0xff] (!%p3282_p12)  ;;  %v3028_v29 = vld [vmem:[#allocation2 + $0x50] sm:$0xff] (!%p3282_p12)  ;;  %v3029_v52 = vld [vmem:[#allocation2 + $0x58] sm:$0xff] (!%p3282_p12) }
 0x35b   : > { %4295 = vlog2.f32 (!%p3282_p12), %v3021_v41  ;;  %v3030_v61 = vld [vmem:[#allocation2 + $0x60] sm:$0xff] (!%p3282_p12)  ;;  %v3031_v49 = vld [vmem:[#allocation2 + $0x68] sm:$0xff] (!%p3282_p12)  ;;  %v3032_v17 = vld [vmem:[#allocation2 + $0x70] sm:$0xff] (!%p3282_p12) }
 0x35c   : > { %4297 = vlog2.f32 (!%p3282_p12), %v3022_v40  ;;  %v3033_v55 = vld [vmem:[#allocation2 + $0x78] sm:$0xff] (!%p3282_p12) }
 0x35d   : > { %4299 = vlog2.f32 (!%p3282_p12), %v3023_v47 }
 0x35e   : > { %4301 = vlog2.f32 (!%p3282_p12), %v3024_v7 }
 0x35f   : > { %4303 = vlog2.f32 %v3025_v8 }
 0x360   : > { %4305 = vlog2.f32 %v3026_v53 }
 0x361   : > { %4307 = vlog2.f32 %v3027_v43 }
 0x362   : > { %v4290_v20 = vpop.eup %4289  ;;  %4309 = vlog2.f32 %v3028_v29 }
 0x363   : > { %v4292_v34 = vpop.eup %4291  ;;  %v3035_v0 = vmul.f32 0.6931472, %v4290_v20  ;;  %4311 = vlog2.f32 %v3029_v52 }
 0x364   : > { %v4294_v3 = vpop.eup %4293  ;;  %v3037_v12 = vmul.f32 0.6931472, %v4292_v34  ;;  %4313 = vlog2.f32 %v3030_v61 }
 0x365   : > { %v4296_v26 = vpop.eup %4295  ;;  %3066 = vst.msk [vmem:[%s4459_s12] sm:$0xff] %vm2674_vm5, %v3035_v0  ;;  %v3039_v4 = vmul.f32 0.6931472, %v4294_v3  ;;  %4315 = vlog2.f32 %v3031_v49 }
 0x366   : > { %v4298_v10 = vpop.eup %4297  ;;  %3067 = vst.msk [vmem:[%s4459_s12 + $0x8] sm:$0xff] %vm2674_vm5, %v3037_v12  ;;  %v3041_v38 = vmul.f32 0.6931472, %v4296_v26  ;;  %4317 = vlog2.f32 %v3032_v17 }
 0x367   : > { %v4300_v22 = vpop.eup %4299  ;;  %3068 = vst.msk [vmem:[%s4459_s12 + $0x10] sm:$0xff] %vm2674_vm5, %v3039_v4  ;;  %v3043_v45 = vmul.f32 0.6931472, %v4298_v10  ;;  %4319 = vlog2.f32 %v3033_v55 }
 0x368   : > { %v4302_v32 = vpop.eup %4301  ;;  %3069 = vst.msk [vmem:[%s4459_s12 + $0x18] sm:$0xff] %vm2674_vm5, %v3041_v38  ;;  %v3045_v46 = vmul.f32 0.6931472, %v4300_v22 }
 0x369   : > { %v4304_v23 = vpop.eup %4303  ;;  %3070 = vst.msk [vmem:[%s4459_s12 + $0x20] sm:$0xff] %vm2674_vm5, %v3043_v45  ;;  %v3047_v16 = vmul.f32 0.6931472, %v4302_v32 }
 0x36a   : > { %v4306_v51 = vpop.eup %4305  ;;  %3071 = vst.msk [vmem:[%s4459_s12 + $0x28] sm:$0xff] %vm2674_vm5, %v3045_v46  ;;  %v3049_v6 = vmul.f32 0.6931472, %v4304_v23 }
 0x36b   : > { %v4308_v1 = vpop.eup %4307  ;;  %3072 = vst.msk [vmem:[%s4459_s12 + $0x30] sm:$0xff] %vm2674_vm5, %v3047_v16  ;;  %v3051_v54 = vmul.f32 0.6931472, %v4306_v51 }
 0x36c   : > { %v4310_v25 = vpop.eup %4309  ;;  %3073 = vst.msk [vmem:[%s4459_s12 + $0x38] sm:$0xff] %vm2674_vm5, %v3049_v6  ;;  %v3053_v57 = vmul.f32 0.6931472, %v4308_v1 }
 0x36d   : > { %v4312_v42 = vpop.eup %4311  ;;  %3074 = vst.msk [vmem:[%s4459_s12 + $0x40] sm:$0xff] %vm2674_vm5, %v3051_v54  ;;  %v3055_v44 = vmul.f32 0.6931472, %v4310_v25 }
 0x36e   : > { %v4314_v5 = vpop.eup %4313  ;;  %3075 = vst.msk [vmem:[%s4459_s12 + $0x48] sm:$0xff] %vm2674_vm5, %v3053_v57  ;;  %v3057_v2 = vmul.f32 0.6931472, %v4312_v42 }
 0x36f   : > { %v4316_v62 = vpop.eup %4315  ;;  %3076 = vst.msk [vmem:[%s4459_s12 + $0x50] sm:$0xff] %vm2674_vm5, %v3055_v44  ;;  %v3059_v15 = vmul.f32 0.6931472, %v4314_v5 }
 0x370   : > { %v4318_v39 = vpop.eup %4317  ;;  %3077 = vst.msk [vmem:[%s4459_s12 + $0x58] sm:$0xff] %vm2674_vm5, %v3057_v2  ;;  %v3061_v59 = vmul.f32 0.6931472, %v4316_v62 }
 0x371   : > { %v4320_v33 = vpop.eup %4319  ;;  %3078 = vst.msk [vmem:[%s4459_s12 + $0x60] sm:$0xff] %vm2674_vm5, %v3059_v15  ;;  %v3063_v9 = vmul.f32 0.6931472, %v4318_v39 }
 0x372   : > { %3079 = vst.msk [vmem:[%s4459_s12 + $0x68] sm:$0xff] %vm2674_vm5, %v3061_v59  ;;  %v3065_v13 = vmul.f32 0.6931472, %v4320_v33 }
 0x373   : > { %3080 = vst.msk [vmem:[%s4459_s12 + $0x70] sm:$0xff] %vm2674_vm5, %v3063_v9 }
 0x374   : > { %3081 = vst.msk [vmem:[%s4459_s12 + $0x78] sm:$0xff] %vm2674_vm5, %v3065_v13 }
 0x375 PF: > { %s18_s28 = sadd.s32 1, %s4359_s28   ;;  %s6279_s16 = sld [smem:[#allocation3_spill]] }
 0x376   : > { %p15_p13 = scmp.ge.s32.totalorder %s18_s28, 6   ;;  %s6280_s10 = sld [smem:[#allocation4_spill]] }
 0x377   : > { %s6281_s24 = smov %s4351_s26  ;;  %s6282_s25 = smov %s4355_s27 }
 0x378   :  { %17 = sbr.rel (!%p15_p13) target bundleno = 3 (0x3), region = 113 }
 0x37b   : > { %s6283_s26 = smov %s6279_s16 }
 0x37c   : > { %s6284_s27 = smov %s6280_s10 }

</bundles_post_ra>
